<compile_context>
chip_gen: v7x
topology: tpu7x:2x2x1
jax: 0.10.0
libtpu: 0.0.40
codegen_flags: <defaults>
</compile_context>

<pallas_src>
import jax
import jax.numpy as jnp
import numpy as np
from jax.experimental import pallas as pl
from jax.experimental.pallas import tpu as pltpu


# ----------------------------- Pallas kernel ------------------------------ #
def _make_dense_block_kernel(layer_dims, H, W, M, eps=1e-5):
    """layer_dims: tuple of (cin, cout) per conv_block. Feature map layout (C, M)."""

    def kernel(*refs):
        # refs = (x_ref, masks_ref, [gamma, beta, w_taps, bias] * L, o_ref)
        x_ref, masks_ref = refs[0], refs[1]
        o_ref = refs[-1]
        param_refs = refs[2:-1]

        c0 = layer_dims[0][0]
        # Feature map lives in the VMEM-resident output buffer; dense concat is
        # just writing each layer's result at the next channel offset.
        o_ref[0:c0, :] = x_ref[...]

        inv_m = 1.0 / float(M)

        for li, (cin, cout) in enumerate(layer_dims):
            g_ref, be_ref, w_ref, bi_ref = param_refs[4 * li:4 * li + 4]

            x = o_ref[0:cin, :]                                   # (cin, M) f32
            # Train-mode BatchNorm2d: batch stats over (N, H, W), biased variance.
            mean = jnp.sum(x, axis=1, keepdims=True) * inv_m      # (cin, 1)
            xc = x - mean
            var = jnp.sum(xc * xc, axis=1, keepdims=True) * inv_m
            scale = g_ref[...] * jax.lax.rsqrt(var + eps)         # gamma / sqrt(var+eps)
            act = jnp.maximum(xc * scale + be_ref[...], 0.0)      # (cin, M) f32, ReLU

            # 3x3 conv = 9 (lane-rotate + mask + MXU matmul) taps.
            acc = jnp.broadcast_to(bi_ref[...], (cout, M))        # bias-initialized acc (f32)
            for t in range(9):
                dy, dx = t // 3 - 1, t % 3 - 1
                off = dy * W + dx                                 # flat spatial offset
                if off == 0:
                    shifted = act
                else:
                    # result[q] = act[(q + off) mod M]  (out-of-image lanes masked below)
                    shifted = pltpu.roll(act, (-off) % M, axis=1)
                mask_t = masks_ref[t:t + 1, :]                    # (1, M) f32 {0,1}
                tap = (shifted * mask_t).astype(jnp.bfloat16)     # bf16 MXU operand
                acc = acc + jnp.dot(w_ref[t], tap,                # (cout,cin)@(cin,M)
                                    preferred_element_type=jnp.float32)

            o_ref[cin:cin + cout, :] = acc

    return kernel


def _make_tap_masks(N, H, W):
    """Border-validity mask per tap over the flattened (N*H*W) lane dimension."""
    M = N * H * W
    q = np.arange(M)
    hw = q % (H * W)
    row = hw // W
    col = hw % W
    masks = np.zeros((9, M), np.float32)
    for t in range(9):
        dy, dx = t // 3 - 1, t % 3 - 1
        valid = (row + dy >= 0) & (row + dy < H) & (col + dx >= 0) & (col + dx < W)
        masks[t] = valid.astype(np.float32)
    return masks


def dense_block_forward(x_nchw, params):
    """Matches DenseBlock.forward: X = cat((X, blk(X)), dim=1) repeatedly."""
    N, C0, H, W = x_nchw.shape
    M = N * H * W

    # NCHW -> (C, N*H*W): channels on sublanes, flattened spatial/batch on lanes.
    x2d = jnp.transpose(x_nchw.astype(jnp.float32), (1, 0, 2, 3)).reshape(C0, M)

    inputs = [x2d, jnp.asarray(_make_tap_masks(N, H, W))]
    layer_dims = []
    for p in params:
        cin = p["gamma"].shape[0]
        cout = p["b"].shape[0]
        layer_dims.append((cin, cout))
        # HWIO (3,3,cin,cout) -> (9, cout, cin), bf16 MXU operand.
        w_taps = jnp.transpose(p["w"], (0, 1, 3, 2)).reshape(9, cout, cin)
        inputs += [
            p["gamma"].reshape(cin, 1).astype(jnp.float32),
            p["beta"].reshape(cin, 1).astype(jnp.float32),
            w_taps.astype(jnp.bfloat16),
            p["b"].reshape(cout, 1).astype(jnp.float32),
        ]

    c_total = C0 + sum(c for _, c in layer_dims)
    kernel = _make_dense_block_kernel(tuple(layer_dims), H, W, M)

    out2d = pl.pallas_call(
        kernel,
        out_shape=jax.ShapeDtypeStruct((c_total, M), jnp.float32),
        in_specs=[pl.BlockSpec(memory_space=pltpu.MemorySpace.VMEM)] * len(inputs),
        out_specs=pl.BlockSpec(memory_space=pltpu.MemorySpace.VMEM),
    )(*inputs)

    # (C_total, N*H*W) -> NCHW
    return jnp.transpose(out2d.reshape(c_total, N, H, W), (1, 0, 2, 3))


# --------------------------- parameter init -------------------------------- #
def init_dense_block_params(key, num_convs, in_channels, out_channels):
    params = []
    for i in range(num_convs):
        in_c = in_channels + i * out_channels
        key, k_w, k_b, k_g, k_be = jax.random.split(key, 5)
        fan_in = in_c * 9
        w = jax.random.uniform(k_w, (3, 3, in_c, out_channels), jnp.float32,
                               -1.0, 1.0) / np.sqrt(fan_in)
        b = jax.random.uniform(k_b, (out_channels,), jnp.float32, -0.1, 0.1)
        gamma = 1.0 + 0.1 * jax.random.normal(k_g, (in_c,), jnp.float32)
        beta = 0.1 * jax.random.normal(k_be, (in_c,), jnp.float32)
        params.append({"gamma": gamma, "beta": beta, "w": w, "b": b})
    return params


# -------------------------- pure-JAX reference ----------------------------- #
def _ref_block(x_nhwc, gamma, beta, w, b, eps=1e-5):
    mean = jnp.mean(x_nhwc, axis=(0, 1, 2))
    var = jnp.mean((x_nhwc - mean) ** 2, axis=(0, 1, 2))
    xn = (x_nhwc - mean) / jnp.sqrt(var + eps) * gamma + beta
    a = jnp.maximum(xn, 0.0)
    y = jax.lax.conv_general_dilated(
        a, w, window_strides=(1, 1), padding="SAME",
        dimension_numbers=("NHWC", "HWIO", "NHWC"))
    return y + b


def dense_block_reference(x_nchw, params):
    x = jnp.transpose(x_nchw.astype(jnp.float32), (0, 2, 3, 1))
    for p in params:
        y = _ref_block(x, p["gamma"], p["beta"], p["w"], p["b"])
        x = jnp.concatenate([x, y], axis=-1)
    return jnp.transpose(x, (0, 3, 1, 2))


# --------------------------------- main ------------------------------------ #
if __name__ == "__main__":
    num_convs = 2
    in_channels = 4
    out_channels = 8          # growth rate
    N, H, W = 2, 16, 16

    key = jax.random.PRNGKey(0)
    key, kx = jax.random.split(key)
    x = jax.random.normal(kx, (N, in_channels, H, W), jnp.float32)   # NCHW like PyTorch

    params = init_dense_block_params(key, num_convs, in_channels, out_channels)

    fwd = jax.jit(dense_block_forward)
    out = jax.block_until_ready(fwd(x, params))

    expected_c = in_channels + num_convs * out_channels
    assert out.shape == (N, expected_c, H, W), out.shape

    ref = jax.block_until_ready(dense_block_reference(x, params))
    # Tolerance loosened vs the f32-only version because MXU operands are bf16.
    np.testing.assert_allclose(np.asarray(out), np.asarray(ref),
                               rtol=2e-2, atol=2e-2)

    print("KERNEL_OK")
</pallas_src>

<mosaic_0001>
module attributes {stable_mosaic.version = 11 : i64} {
  func.func @kernel(%arg0: memref<4x512xf32, #tpu.memory_space<vmem>>, %arg1: memref<9x512xf32, #tpu.memory_space<vmem>>, %arg2: memref<4x1xf32, #tpu.memory_space<vmem>>, %arg3: memref<4x1xf32, #tpu.memory_space<vmem>>, %arg4: memref<9x8x4xbf16, #tpu.memory_space<vmem>>, %arg5: memref<8x1xf32, #tpu.memory_space<vmem>>, %arg6: memref<12x1xf32, #tpu.memory_space<vmem>>, %arg7: memref<12x1xf32, #tpu.memory_space<vmem>>, %arg8: memref<9x8x12xbf16, #tpu.memory_space<vmem>>, %arg9: memref<8x1xf32, #tpu.memory_space<vmem>>, %arg10: memref<20x512xf32, #tpu.memory_space<vmem>>) attributes {dimension_semantics = [], scalar_prefetch = 0 : i64, scratch_operands = 0 : i64, tpu.core_type = #tpu.core_type<tc>} {
    %c0 = arith.constant 0 : index
    %c0_0 = arith.constant 0 : index
    %0 = vector.load %arg0[%c0, %c0_0] : memref<4x512xf32, #tpu.memory_space<vmem>>, vector<4x512xf32>
    %c0_1 = arith.constant 0 : index
    %c0_2 = arith.constant 0 : index
    %1 = vector.load %arg10[%c0_1, %c0_2] : memref<20x512xf32, #tpu.memory_space<vmem>>, vector<4x512xf32>
    tpu.vector_store %arg10[%c0_1, %c0_2], %0 {strides = array<i32>} : memref<20x512xf32, #tpu.memory_space<vmem>>, vector<4x512xf32>,
    %c0_3 = arith.constant 0 : index
    %c0_4 = arith.constant 0 : index
    %2 = vector.load %arg10[%c0_3, %c0_4] : memref<20x512xf32, #tpu.memory_space<vmem>>, vector<4x512xf32>
    %cst = arith.constant dense<0.000000e+00> : vector<4xf32>
    %3 = vector.multi_reduction <add>, %2, %cst [1] : vector<4x512xf32> to vector<4xf32>
    %4 = vector.shape_cast %3 : vector<4xf32> to vector<4x1xf32>
    %cst_5 = arith.constant 0.001953125 : f32
    %5 = vector.broadcast %cst_5 : f32 to vector<4x1xf32>
    %6 = arith.mulf %4, %5 : vector<4x1xf32>
    %7 = vector.broadcast %6 : vector<4x1xf32> to vector<4x512xf32>
    %8 = arith.subf %2, %7 : vector<4x512xf32>
    %9 = arith.mulf %8, %8 : vector<4x512xf32>
    %cst_6 = arith.constant dense<0.000000e+00> : vector<4xf32>
    %10 = vector.multi_reduction <add>, %9, %cst_6 [1] : vector<4x512xf32> to vector<4xf32>
    %11 = vector.shape_cast %10 : vector<4xf32> to vector<4x1xf32>
    %cst_7 = arith.constant 0.001953125 : f32
    %12 = vector.broadcast %cst_7 : f32 to vector<4x1xf32>
    %13 = arith.mulf %11, %12 : vector<4x1xf32>
    %c0_8 = arith.constant 0 : index
    %c0_9 = arith.constant 0 : index
    %14 = vector.load %arg2[%c0_8, %c0_9] : memref<4x1xf32, #tpu.memory_space<vmem>>, vector<4x1xf32>
    %cst_10 = arith.constant 9.99999974E-6 : f32
    %15 = vector.broadcast %cst_10 : f32 to vector<4x1xf32>
    %16 = arith.addf %13, %15 : vector<4x1xf32>
    %17 = math.rsqrt %16 : vector<4x1xf32>
    %18 = arith.mulf %14, %17 : vector<4x1xf32>
    %19 = vector.broadcast %18 : vector<4x1xf32> to vector<4x512xf32>
    %20 = arith.mulf %8, %19 : vector<4x512xf32>
    %c0_11 = arith.constant 0 : index
    %c0_12 = arith.constant 0 : index
    %21 = vector.load %arg3[%c0_11, %c0_12] : memref<4x1xf32, #tpu.memory_space<vmem>>, vector<4x1xf32>
    %22 = vector.broadcast %21 : vector<4x1xf32> to vector<4x512xf32>
    %23 = arith.addf %20, %22 : vector<4x512xf32>
    %cst_13 = arith.constant 0.000000e+00 : f32
    %24 = vector.broadcast %cst_13 : f32 to vector<4x512xf32>
    %25 = arith.maximumf %23, %24 : vector<4x512xf32>
    %c0_14 = arith.constant 0 : index
    %c0_15 = arith.constant 0 : index
    %26 = vector.load %arg5[%c0_14, %c0_15] : memref<8x1xf32, #tpu.memory_space<vmem>>, vector<8x1xf32>
    %27 = vector.shape_cast %26 : vector<8x1xf32> to vector<8x1xf32>
    %28 = vector.broadcast %27 : vector<8x1xf32> to vector<8x512xf32>
    %c17_i32 = arith.constant 17 : i32
    %29 = tpu.dynamic_rotate %25 by %c17_i32 dim 1 : vector<4x512xf32>, i32 -> vector<4x512xf32>
    %c0_16 = arith.constant 0 : index
    %c0_17 = arith.constant 0 : index
    %30 = vector.load %arg1[%c0_16, %c0_17] : memref<9x512xf32, #tpu.memory_space<vmem>>, vector<1x512xf32>
    %31 = vector.broadcast %30 : vector<1x512xf32> to vector<4x512xf32>
    %32 = arith.mulf %29, %31 : vector<4x512xf32>
    %33 = arith.truncf %32 : vector<4x512xf32> to vector<4x512xbf16>
    %c0_18 = arith.constant 0 : index
    %c0_19 = arith.constant 0 : index
    %c0_20 = arith.constant 0 : index
    %34 = vector.load %arg4[%c0_18, %c0_19, %c0_20] : memref<9x8x4xbf16, #tpu.memory_space<vmem>>, vector<1x8x4xbf16>
    %35 = vector.shape_cast %34 : vector<1x8x4xbf16> to vector<8x4xbf16>
    %cst_21 = arith.constant dense<0.000000e+00> : vector<8x512xf32>
    %36 = tpu.matmul %35, %33, %cst_21 {dimension_numbers = #tpu.dot_dimension_numbers<[1], [0], [0], [1], [0, 0, 1, 1], [], []>} : vector<8x4xbf16>, vector<4x512xbf16>, vector<8x512xf32> -> vector<8x512xf32>
    %37 = arith.addf %28, %36 : vector<8x512xf32>
    %c16_i32 = arith.constant 16 : i32
    %38 = tpu.dynamic_rotate %25 by %c16_i32 dim 1 : vector<4x512xf32>, i32 -> vector<4x512xf32>
    %c1 = arith.constant 1 : index
    %c0_22 = arith.constant 0 : index
    %39 = vector.load %arg1[%c1, %c0_22] : memref<9x512xf32, #tpu.memory_space<vmem>>, vector<1x512xf32>
    %40 = vector.broadcast %39 : vector<1x512xf32> to vector<4x512xf32>
    %41 = arith.mulf %38, %40 : vector<4x512xf32>
    %42 = arith.truncf %41 : vector<4x512xf32> to vector<4x512xbf16>
    %c1_23 = arith.constant 1 : index
    %c0_24 = arith.constant 0 : index
    %c0_25 = arith.constant 0 : index
    %43 = vector.load %arg4[%c1_23, %c0_24, %c0_25] : memref<9x8x4xbf16, #tpu.memory_space<vmem>>, vector<1x8x4xbf16>
    %44 = vector.shape_cast %43 : vector<1x8x4xbf16> to vector<8x4xbf16>
    %cst_26 = arith.constant dense<0.000000e+00> : vector<8x512xf32>
    %45 = tpu.matmul %44, %42, %cst_26 {dimension_numbers = #tpu.dot_dimension_numbers<[1], [0], [0], [1], [0, 0, 1, 1], [], []>} : vector<8x4xbf16>, vector<4x512xbf16>, vector<8x512xf32> -> vector<8x512xf32>
    %46 = arith.addf %37, %45 : vector<8x512xf32>
    %c15_i32 = arith.constant 15 : i32
    %47 = tpu.dynamic_rotate %25 by %c15_i32 dim 1 : vector<4x512xf32>, i32 -> vector<4x512xf32>
    %c2 = arith.constant 2 : index
    %c0_27 = arith.constant 0 : index
    %48 = vector.load %arg1[%c2, %c0_27] : memref<9x512xf32, #tpu.memory_space<vmem>>, vector<1x512xf32>
    %49 = vector.broadcast %48 : vector<1x512xf32> to vector<4x512xf32>
    %50 = arith.mulf %47, %49 : vector<4x512xf32>
    %51 = arith.truncf %50 : vector<4x512xf32> to vector<4x512xbf16>
    %c2_28 = arith.constant 2 : index
    %c0_29 = arith.constant 0 : index
    %c0_30 = arith.constant 0 : index
    %52 = vector.load %arg4[%c2_28, %c0_29, %c0_30] : memref<9x8x4xbf16, #tpu.memory_space<vmem>>, vector<1x8x4xbf16>
    %53 = vector.shape_cast %52 : vector<1x8x4xbf16> to vector<8x4xbf16>
    %cst_31 = arith.constant dense<0.000000e+00> : vector<8x512xf32>
    %54 = tpu.matmul %53, %51, %cst_31 {dimension_numbers = #tpu.dot_dimension_numbers<[1], [0], [0], [1], [0, 0, 1, 1], [], []>} : vector<8x4xbf16>, vector<4x512xbf16>, vector<8x512xf32> -> vector<8x512xf32>
    %55 = arith.addf %46, %54 : vector<8x512xf32>
    %c1_i32 = arith.constant 1 : i32
    %56 = tpu.dynamic_rotate %25 by %c1_i32 dim 1 : vector<4x512xf32>, i32 -> vector<4x512xf32>
    %c3 = arith.constant 3 : index
    %c0_32 = arith.constant 0 : index
    %57 = vector.load %arg1[%c3, %c0_32] : memref<9x512xf32, #tpu.memory_space<vmem>>, vector<1x512xf32>
    %58 = vector.broadcast %57 : vector<1x512xf32> to vector<4x512xf32>
    %59 = arith.mulf %56, %58 : vector<4x512xf32>
    %60 = arith.truncf %59 : vector<4x512xf32> to vector<4x512xbf16>
    %c3_33 = arith.constant 3 : index
    %c0_34 = arith.constant 0 : index
    %c0_35 = arith.constant 0 : index
    %61 = vector.load %arg4[%c3_33, %c0_34, %c0_35] : memref<9x8x4xbf16, #tpu.memory_space<vmem>>, vector<1x8x4xbf16>
    %62 = vector.shape_cast %61 : vector<1x8x4xbf16> to vector<8x4xbf16>
    %cst_36 = arith.constant dense<0.000000e+00> : vector<8x512xf32>
    %63 = tpu.matmul %62, %60, %cst_36 {dimension_numbers = #tpu.dot_dimension_numbers<[1], [0], [0], [1], [0, 0, 1, 1], [], []>} : vector<8x4xbf16>, vector<4x512xbf16>, vector<8x512xf32> -> vector<8x512xf32>
    %64 = arith.addf %55, %63 : vector<8x512xf32>
    %c4 = arith.constant 4 : index
    %c0_37 = arith.constant 0 : index
    %65 = vector.load %arg1[%c4, %c0_37] : memref<9x512xf32, #tpu.memory_space<vmem>>, vector<1x512xf32>
    %66 = vector.broadcast %65 : vector<1x512xf32> to vector<4x512xf32>
    %67 = arith.mulf %25, %66 : vector<4x512xf32>
    %68 = arith.truncf %67 : vector<4x512xf32> to vector<4x512xbf16>
    %c4_38 = arith.constant 4 : index
    %c0_39 = arith.constant 0 : index
    %c0_40 = arith.constant 0 : index
    %69 = vector.load %arg4[%c4_38, %c0_39, %c0_40] : memref<9x8x4xbf16, #tpu.memory_space<vmem>>, vector<1x8x4xbf16>
    %70 = vector.shape_cast %69 : vector<1x8x4xbf16> to vector<8x4xbf16>
    %cst_41 = arith.constant dense<0.000000e+00> : vector<8x512xf32>
    %71 = tpu.matmul %70, %68, %cst_41 {dimension_numbers = #tpu.dot_dimension_numbers<[1], [0], [0], [1], [0, 0, 1, 1], [], []>} : vector<8x4xbf16>, vector<4x512xbf16>, vector<8x512xf32> -> vector<8x512xf32>
    %72 = arith.addf %64, %71 : vector<8x512xf32>
    %c511_i32 = arith.constant 511 : i32
    %73 = tpu.dynamic_rotate %25 by %c511_i32 dim 1 : vector<4x512xf32>, i32 -> vector<4x512xf32>
    %c5 = arith.constant 5 : index
    %c0_42 = arith.constant 0 : index
    %74 = vector.load %arg1[%c5, %c0_42] : memref<9x512xf32, #tpu.memory_space<vmem>>, vector<1x512xf32>
    %75 = vector.broadcast %74 : vector<1x512xf32> to vector<4x512xf32>
    %76 = arith.mulf %73, %75 : vector<4x512xf32>
    %77 = arith.truncf %76 : vector<4x512xf32> to vector<4x512xbf16>
    %c5_43 = arith.constant 5 : index
    %c0_44 = arith.constant 0 : index
    %c0_45 = arith.constant 0 : index
    %78 = vector.load %arg4[%c5_43, %c0_44, %c0_45] : memref<9x8x4xbf16, #tpu.memory_space<vmem>>, vector<1x8x4xbf16>
    %79 = vector.shape_cast %78 : vector<1x8x4xbf16> to vector<8x4xbf16>
    %cst_46 = arith.constant dense<0.000000e+00> : vector<8x512xf32>
    %80 = tpu.matmul %79, %77, %cst_46 {dimension_numbers = #tpu.dot_dimension_numbers<[1], [0], [0], [1], [0, 0, 1, 1], [], []>} : vector<8x4xbf16>, vector<4x512xbf16>, vector<8x512xf32> -> vector<8x512xf32>
    %81 = arith.addf %72, %80 : vector<8x512xf32>
    %c497_i32 = arith.constant 497 : i32
    %82 = tpu.dynamic_rotate %25 by %c497_i32 dim 1 : vector<4x512xf32>, i32 -> vector<4x512xf32>
    %c6 = arith.constant 6 : index
    %c0_47 = arith.constant 0 : index
    %83 = vector.load %arg1[%c6, %c0_47] : memref<9x512xf32, #tpu.memory_space<vmem>>, vector<1x512xf32>
    %84 = vector.broadcast %83 : vector<1x512xf32> to vector<4x512xf32>
    %85 = arith.mulf %82, %84 : vector<4x512xf32>
    %86 = arith.truncf %85 : vector<4x512xf32> to vector<4x512xbf16>
    %c6_48 = arith.constant 6 : index
    %c0_49 = arith.constant 0 : index
    %c0_50 = arith.constant 0 : index
    %87 = vector.load %arg4[%c6_48, %c0_49, %c0_50] : memref<9x8x4xbf16, #tpu.memory_space<vmem>>, vector<1x8x4xbf16>
    %88 = vector.shape_cast %87 : vector<1x8x4xbf16> to vector<8x4xbf16>
    %cst_51 = arith.constant dense<0.000000e+00> : vector<8x512xf32>
    %89 = tpu.matmul %88, %86, %cst_51 {dimension_numbers = #tpu.dot_dimension_numbers<[1], [0], [0], [1], [0, 0, 1, 1], [], []>} : vector<8x4xbf16>, vector<4x512xbf16>, vector<8x512xf32> -> vector<8x512xf32>
    %90 = arith.addf %81, %89 : vector<8x512xf32>
    %c496_i32 = arith.constant 496 : i32
    %91 = tpu.dynamic_rotate %25 by %c496_i32 dim 1 : vector<4x512xf32>, i32 -> vector<4x512xf32>
    %c7 = arith.constant 7 : index
    %c0_52 = arith.constant 0 : index
    %92 = vector.load %arg1[%c7, %c0_52] : memref<9x512xf32, #tpu.memory_space<vmem>>, vector<1x512xf32>
    %93 = vector.broadcast %92 : vector<1x512xf32> to vector<4x512xf32>
    %94 = arith.mulf %91, %93 : vector<4x512xf32>
    %95 = arith.truncf %94 : vector<4x512xf32> to vector<4x512xbf16>
    %c7_53 = arith.constant 7 : index
    %c0_54 = arith.constant 0 : index
    %c0_55 = arith.constant 0 : index
    %96 = vector.load %arg4[%c7_53, %c0_54, %c0_55] : memref<9x8x4xbf16, #tpu.memory_space<vmem>>, vector<1x8x4xbf16>
    %97 = vector.shape_cast %96 : vector<1x8x4xbf16> to vector<8x4xbf16>
    %cst_56 = arith.constant dense<0.000000e+00> : vector<8x512xf32>
    %98 = tpu.matmul %97, %95, %cst_56 {dimension_numbers = #tpu.dot_dimension_numbers<[1], [0], [0], [1], [0, 0, 1, 1], [], []>} : vector<8x4xbf16>, vector<4x512xbf16>, vector<8x512xf32> -> vector<8x512xf32>
    %99 = arith.addf %90, %98 : vector<8x512xf32>
    %c495_i32 = arith.constant 495 : i32
    %100 = tpu.dynamic_rotate %25 by %c495_i32 dim 1 : vector<4x512xf32>, i32 -> vector<4x512xf32>
    %c8 = arith.constant 8 : index
    %c0_57 = arith.constant 0 : index
    %101 = vector.load %arg1[%c8, %c0_57] : memref<9x512xf32, #tpu.memory_space<vmem>>, vector<1x512xf32>
    %102 = vector.broadcast %101 : vector<1x512xf32> to vector<4x512xf32>
    %103 = arith.mulf %100, %102 : vector<4x512xf32>
    %104 = arith.truncf %103 : vector<4x512xf32> to vector<4x512xbf16>
    %c8_58 = arith.constant 8 : index
    %c0_59 = arith.constant 0 : index
    %c0_60 = arith.constant 0 : index
    %105 = vector.load %arg4[%c8_58, %c0_59, %c0_60] : memref<9x8x4xbf16, #tpu.memory_space<vmem>>, vector<1x8x4xbf16>
    %106 = vector.shape_cast %105 : vector<1x8x4xbf16> to vector<8x4xbf16>
    %cst_61 = arith.constant dense<0.000000e+00> : vector<8x512xf32>
    %107 = tpu.matmul %106, %104, %cst_61 {dimension_numbers = #tpu.dot_dimension_numbers<[1], [0], [0], [1], [0, 0, 1, 1], [], []>} : vector<8x4xbf16>, vector<4x512xbf16>, vector<8x512xf32> -> vector<8x512xf32>
    %108 = arith.addf %99, %107 : vector<8x512xf32>
    %c4_62 = arith.constant 4 : index
    %c0_63 = arith.constant 0 : index
    %109 = vector.load %arg10[%c4_62, %c0_63] : memref<20x512xf32, #tpu.memory_space<vmem>>, vector<8x512xf32>
    tpu.vector_store %arg10[%c4_62, %c0_63], %108 {strides = array<i32>} : memref<20x512xf32, #tpu.memory_space<vmem>>, vector<8x512xf32>,
    %c0_64 = arith.constant 0 : index
    %c0_65 = arith.constant 0 : index
    %110 = vector.load %arg10[%c0_64, %c0_65] : memref<20x512xf32, #tpu.memory_space<vmem>>, vector<12x512xf32>
    %cst_66 = arith.constant dense<0.000000e+00> : vector<12xf32>
    %111 = vector.multi_reduction <add>, %110, %cst_66 [1] : vector<12x512xf32> to vector<12xf32>
    %112 = vector.shape_cast %111 : vector<12xf32> to vector<12x1xf32>
    %cst_67 = arith.constant 0.001953125 : f32
    %113 = vector.broadcast %cst_67 : f32 to vector<12x1xf32>
    %114 = arith.mulf %112, %113 : vector<12x1xf32>
    %115 = vector.broadcast %114 : vector<12x1xf32> to vector<12x512xf32>
    %116 = arith.subf %110, %115 : vector<12x512xf32>
    %117 = arith.mulf %116, %116 : vector<12x512xf32>
    %cst_68 = arith.constant dense<0.000000e+00> : vector<12xf32>
    %118 = vector.multi_reduction <add>, %117, %cst_68 [1] : vector<12x512xf32> to vector<12xf32>
    %119 = vector.shape_cast %118 : vector<12xf32> to vector<12x1xf32>
    %cst_69 = arith.constant 0.001953125 : f32
    %120 = vector.broadcast %cst_69 : f32 to vector<12x1xf32>
    %121 = arith.mulf %119, %120 : vector<12x1xf32>
    %c0_70 = arith.constant 0 : index
    %c0_71 = arith.constant 0 : index
    %122 = vector.load %arg6[%c0_70, %c0_71] : memref<12x1xf32, #tpu.memory_space<vmem>>, vector<12x1xf32>
    %cst_72 = arith.constant 9.99999974E-6 : f32
    %123 = vector.broadcast %cst_72 : f32 to vector<12x1xf32>
    %124 = arith.addf %121, %123 : vector<12x1xf32>
    %125 = math.rsqrt %124 : vector<12x1xf32>
    %126 = arith.mulf %122, %125 : vector<12x1xf32>
    %127 = vector.broadcast %126 : vector<12x1xf32> to vector<12x512xf32>
    %128 = arith.mulf %116, %127 : vector<12x512xf32>
    %c0_73 = arith.constant 0 : index
    %c0_74 = arith.constant 0 : index
    %129 = vector.load %arg7[%c0_73, %c0_74] : memref<12x1xf32, #tpu.memory_space<vmem>>, vector<12x1xf32>
    %130 = vector.broadcast %129 : vector<12x1xf32> to vector<12x512xf32>
    %131 = arith.addf %128, %130 : vector<12x512xf32>
    %cst_75 = arith.constant 0.000000e+00 : f32
    %132 = vector.broadcast %cst_75 : f32 to vector<12x512xf32>
    %133 = arith.maximumf %131, %132 : vector<12x512xf32>
    %c0_76 = arith.constant 0 : index
    %c0_77 = arith.constant 0 : index
    %134 = vector.load %arg9[%c0_76, %c0_77] : memref<8x1xf32, #tpu.memory_space<vmem>>, vector<8x1xf32>
    %135 = vector.shape_cast %134 : vector<8x1xf32> to vector<8x1xf32>
    %136 = vector.broadcast %135 : vector<8x1xf32> to vector<8x512xf32>
    %c17_i32_78 = arith.constant 17 : i32
    %137 = tpu.dynamic_rotate %133 by %c17_i32_78 dim 1 : vector<12x512xf32>, i32 -> vector<12x512xf32>
    %c0_79 = arith.constant 0 : index
    %c0_80 = arith.constant 0 : index
    %138 = vector.load %arg1[%c0_79, %c0_80] : memref<9x512xf32, #tpu.memory_space<vmem>>, vector<1x512xf32>
    %139 = vector.broadcast %138 : vector<1x512xf32> to vector<12x512xf32>
    %140 = arith.mulf %137, %139 : vector<12x512xf32>
    %141 = arith.truncf %140 : vector<12x512xf32> to vector<12x512xbf16>
    %c0_81 = arith.constant 0 : index
    %c0_82 = arith.constant 0 : index
    %c0_83 = arith.constant 0 : index
    %142 = vector.load %arg8[%c0_81, %c0_82, %c0_83] : memref<9x8x12xbf16, #tpu.memory_space<vmem>>, vector<1x8x12xbf16>
    %143 = vector.shape_cast %142 : vector<1x8x12xbf16> to vector<8x12xbf16>
    %cst_84 = arith.constant dense<0.000000e+00> : vector<8x512xf32>
    %144 = tpu.matmul %143, %141, %cst_84 {dimension_numbers = #tpu.dot_dimension_numbers<[1], [0], [0], [1], [0, 0, 1, 1], [], []>} : vector<8x12xbf16>, vector<12x512xbf16>, vector<8x512xf32> -> vector<8x512xf32>
    %145 = arith.addf %136, %144 : vector<8x512xf32>
    %c16_i32_85 = arith.constant 16 : i32
    %146 = tpu.dynamic_rotate %133 by %c16_i32_85 dim 1 : vector<12x512xf32>, i32 -> vector<12x512xf32>
    %c1_86 = arith.constant 1 : index
    %c0_87 = arith.constant 0 : index
    %147 = vector.load %arg1[%c1_86, %c0_87] : memref<9x512xf32, #tpu.memory_space<vmem>>, vector<1x512xf32>
    %148 = vector.broadcast %147 : vector<1x512xf32> to vector<12x512xf32>
    %149 = arith.mulf %146, %148 : vector<12x512xf32>
    %150 = arith.truncf %149 : vector<12x512xf32> to vector<12x512xbf16>
    %c1_88 = arith.constant 1 : index
    %c0_89 = arith.constant 0 : index
    %c0_90 = arith.constant 0 : index
    %151 = vector.load %arg8[%c1_88, %c0_89, %c0_90] : memref<9x8x12xbf16, #tpu.memory_space<vmem>>, vector<1x8x12xbf16>
    %152 = vector.shape_cast %151 : vector<1x8x12xbf16> to vector<8x12xbf16>
    %cst_91 = arith.constant dense<0.000000e+00> : vector<8x512xf32>
    %153 = tpu.matmul %152, %150, %cst_91 {dimension_numbers = #tpu.dot_dimension_numbers<[1], [0], [0], [1], [0, 0, 1, 1], [], []>} : vector<8x12xbf16>, vector<12x512xbf16>, vector<8x512xf32> -> vector<8x512xf32>
    %154 = arith.addf %145, %153 : vector<8x512xf32>
    %c15_i32_92 = arith.constant 15 : i32
    %155 = tpu.dynamic_rotate %133 by %c15_i32_92 dim 1 : vector<12x512xf32>, i32 -> vector<12x512xf32>
    %c2_93 = arith.constant 2 : index
    %c0_94 = arith.constant 0 : index
    %156 = vector.load %arg1[%c2_93, %c0_94] : memref<9x512xf32, #tpu.memory_space<vmem>>, vector<1x512xf32>
    %157 = vector.broadcast %156 : vector<1x512xf32> to vector<12x512xf32>
    %158 = arith.mulf %155, %157 : vector<12x512xf32>
    %159 = arith.truncf %158 : vector<12x512xf32> to vector<12x512xbf16>
    %c2_95 = arith.constant 2 : index
    %c0_96 = arith.constant 0 : index
    %c0_97 = arith.constant 0 : index
    %160 = vector.load %arg8[%c2_95, %c0_96, %c0_97] : memref<9x8x12xbf16, #tpu.memory_space<vmem>>, vector<1x8x12xbf16>
    %161 = vector.shape_cast %160 : vector<1x8x12xbf16> to vector<8x12xbf16>
    %cst_98 = arith.constant dense<0.000000e+00> : vector<8x512xf32>
    %162 = tpu.matmul %161, %159, %cst_98 {dimension_numbers = #tpu.dot_dimension_numbers<[1], [0], [0], [1], [0, 0, 1, 1], [], []>} : vector<8x12xbf16>, vector<12x512xbf16>, vector<8x512xf32> -> vector<8x512xf32>
    %163 = arith.addf %154, %162 : vector<8x512xf32>
    %c1_i32_99 = arith.constant 1 : i32
    %164 = tpu.dynamic_rotate %133 by %c1_i32_99 dim 1 : vector<12x512xf32>, i32 -> vector<12x512xf32>
    %c3_100 = arith.constant 3 : index
    %c0_101 = arith.constant 0 : index
    %165 = vector.load %arg1[%c3_100, %c0_101] : memref<9x512xf32, #tpu.memory_space<vmem>>, vector<1x512xf32>
    %166 = vector.broadcast %165 : vector<1x512xf32> to vector<12x512xf32>
    %167 = arith.mulf %164, %166 : vector<12x512xf32>
    %168 = arith.truncf %167 : vector<12x512xf32> to vector<12x512xbf16>
    %c3_102 = arith.constant 3 : index
    %c0_103 = arith.constant 0 : index
    %c0_104 = arith.constant 0 : index
    %169 = vector.load %arg8[%c3_102, %c0_103, %c0_104] : memref<9x8x12xbf16, #tpu.memory_space<vmem>>, vector<1x8x12xbf16>
    %170 = vector.shape_cast %169 : vector<1x8x12xbf16> to vector<8x12xbf16>
    %cst_105 = arith.constant dense<0.000000e+00> : vector<8x512xf32>
    %171 = tpu.matmul %170, %168, %cst_105 {dimension_numbers = #tpu.dot_dimension_numbers<[1], [0], [0], [1], [0, 0, 1, 1], [], []>} : vector<8x12xbf16>, vector<12x512xbf16>, vector<8x512xf32> -> vector<8x512xf32>
    %172 = arith.addf %163, %171 : vector<8x512xf32>
    %c4_106 = arith.constant 4 : index
    %c0_107 = arith.constant 0 : index
    %173 = vector.load %arg1[%c4_106, %c0_107] : memref<9x512xf32, #tpu.memory_space<vmem>>, vector<1x512xf32>
    %174 = vector.broadcast %173 : vector<1x512xf32> to vector<12x512xf32>
    %175 = arith.mulf %133, %174 : vector<12x512xf32>
    %176 = arith.truncf %175 : vector<12x512xf32> to vector<12x512xbf16>
    %c4_108 = arith.constant 4 : index
    %c0_109 = arith.constant 0 : index
    %c0_110 = arith.constant 0 : index
    %177 = vector.load %arg8[%c4_108, %c0_109, %c0_110] : memref<9x8x12xbf16, #tpu.memory_space<vmem>>, vector<1x8x12xbf16>
    %178 = vector.shape_cast %177 : vector<1x8x12xbf16> to vector<8x12xbf16>
    %cst_111 = arith.constant dense<0.000000e+00> : vector<8x512xf32>
    %179 = tpu.matmul %178, %176, %cst_111 {dimension_numbers = #tpu.dot_dimension_numbers<[1], [0], [0], [1], [0, 0, 1, 1], [], []>} : vector<8x12xbf16>, vector<12x512xbf16>, vector<8x512xf32> -> vector<8x512xf32>
    %180 = arith.addf %172, %179 : vector<8x512xf32>
    %c511_i32_112 = arith.constant 511 : i32
    %181 = tpu.dynamic_rotate %133 by %c511_i32_112 dim 1 : vector<12x512xf32>, i32 -> vector<12x512xf32>
    %c5_113 = arith.constant 5 : index
    %c0_114 = arith.constant 0 : index
    %182 = vector.load %arg1[%c5_113, %c0_114] : memref<9x512xf32, #tpu.memory_space<vmem>>, vector<1x512xf32>
    %183 = vector.broadcast %182 : vector<1x512xf32> to vector<12x512xf32>
    %184 = arith.mulf %181, %183 : vector<12x512xf32>
    %185 = arith.truncf %184 : vector<12x512xf32> to vector<12x512xbf16>
    %c5_115 = arith.constant 5 : index
    %c0_116 = arith.constant 0 : index
    %c0_117 = arith.constant 0 : index
    %186 = vector.load %arg8[%c5_115, %c0_116, %c0_117] : memref<9x8x12xbf16, #tpu.memory_space<vmem>>, vector<1x8x12xbf16>
    %187 = vector.shape_cast %186 : vector<1x8x12xbf16> to vector<8x12xbf16>
    %cst_118 = arith.constant dense<0.000000e+00> : vector<8x512xf32>
    %188 = tpu.matmul %187, %185, %cst_118 {dimension_numbers = #tpu.dot_dimension_numbers<[1], [0], [0], [1], [0, 0, 1, 1], [], []>} : vector<8x12xbf16>, vector<12x512xbf16>, vector<8x512xf32> -> vector<8x512xf32>
    %189 = arith.addf %180, %188 : vector<8x512xf32>
    %c497_i32_119 = arith.constant 497 : i32
    %190 = tpu.dynamic_rotate %133 by %c497_i32_119 dim 1 : vector<12x512xf32>, i32 -> vector<12x512xf32>
    %c6_120 = arith.constant 6 : index
    %c0_121 = arith.constant 0 : index
    %191 = vector.load %arg1[%c6_120, %c0_121] : memref<9x512xf32, #tpu.memory_space<vmem>>, vector<1x512xf32>
    %192 = vector.broadcast %191 : vector<1x512xf32> to vector<12x512xf32>
    %193 = arith.mulf %190, %192 : vector<12x512xf32>
    %194 = arith.truncf %193 : vector<12x512xf32> to vector<12x512xbf16>
    %c6_122 = arith.constant 6 : index
    %c0_123 = arith.constant 0 : index
    %c0_124 = arith.constant 0 : index
    %195 = vector.load %arg8[%c6_122, %c0_123, %c0_124] : memref<9x8x12xbf16, #tpu.memory_space<vmem>>, vector<1x8x12xbf16>
    %196 = vector.shape_cast %195 : vector<1x8x12xbf16> to vector<8x12xbf16>
    %cst_125 = arith.constant dense<0.000000e+00> : vector<8x512xf32>
    %197 = tpu.matmul %196, %194, %cst_125 {dimension_numbers = #tpu.dot_dimension_numbers<[1], [0], [0], [1], [0, 0, 1, 1], [], []>} : vector<8x12xbf16>, vector<12x512xbf16>, vector<8x512xf32> -> vector<8x512xf32>
    %198 = arith.addf %189, %197 : vector<8x512xf32>
    %c496_i32_126 = arith.constant 496 : i32
    %199 = tpu.dynamic_rotate %133 by %c496_i32_126 dim 1 : vector<12x512xf32>, i32 -> vector<12x512xf32>
    %c7_127 = arith.constant 7 : index
    %c0_128 = arith.constant 0 : index
    %200 = vector.load %arg1[%c7_127, %c0_128] : memref<9x512xf32, #tpu.memory_space<vmem>>, vector<1x512xf32>
    %201 = vector.broadcast %200 : vector<1x512xf32> to vector<12x512xf32>
    %202 = arith.mulf %199, %201 : vector<12x512xf32>
    %203 = arith.truncf %202 : vector<12x512xf32> to vector<12x512xbf16>
    %c7_129 = arith.constant 7 : index
    %c0_130 = arith.constant 0 : index
    %c0_131 = arith.constant 0 : index
    %204 = vector.load %arg8[%c7_129, %c0_130, %c0_131] : memref<9x8x12xbf16, #tpu.memory_space<vmem>>, vector<1x8x12xbf16>
    %205 = vector.shape_cast %204 : vector<1x8x12xbf16> to vector<8x12xbf16>
    %cst_132 = arith.constant dense<0.000000e+00> : vector<8x512xf32>
    %206 = tpu.matmul %205, %203, %cst_132 {dimension_numbers = #tpu.dot_dimension_numbers<[1], [0], [0], [1], [0, 0, 1, 1], [], []>} : vector<8x12xbf16>, vector<12x512xbf16>, vector<8x512xf32> -> vector<8x512xf32>
    %207 = arith.addf %198, %206 : vector<8x512xf32>
    %c495_i32_133 = arith.constant 495 : i32
    %208 = tpu.dynamic_rotate %133 by %c495_i32_133 dim 1 : vector<12x512xf32>, i32 -> vector<12x512xf32>
    %c8_134 = arith.constant 8 : index
    %c0_135 = arith.constant 0 : index
    %209 = vector.load %arg1[%c8_134, %c0_135] : memref<9x512xf32, #tpu.memory_space<vmem>>, vector<1x512xf32>
    %210 = vector.broadcast %209 : vector<1x512xf32> to vector<12x512xf32>
    %211 = arith.mulf %208, %210 : vector<12x512xf32>
    %212 = arith.truncf %211 : vector<12x512xf32> to vector<12x512xbf16>
    %c8_136 = arith.constant 8 : index
    %c0_137 = arith.constant 0 : index
    %c0_138 = arith.constant 0 : index
    %213 = vector.load %arg8[%c8_136, %c0_137, %c0_138] : memref<9x8x12xbf16, #tpu.memory_space<vmem>>, vector<1x8x12xbf16>
    %214 = vector.shape_cast %213 : vector<1x8x12xbf16> to vector<8x12xbf16>
    %cst_139 = arith.constant dense<0.000000e+00> : vector<8x512xf32>
    %215 = tpu.matmul %214, %212, %cst_139 {dimension_numbers = #tpu.dot_dimension_numbers<[1], [0], [0], [1], [0, 0, 1, 1], [], []>} : vector<8x12xbf16>, vector<12x512xbf16>, vector<8x512xf32> -> vector<8x512xf32>
    %216 = arith.addf %207, %215 : vector<8x512xf32>
    %c12 = arith.constant 12 : index
    %c0_140 = arith.constant 0 : index
    %217 = vector.load %arg10[%c12, %c0_140] : memref<20x512xf32, #tpu.memory_space<vmem>>, vector<8x512xf32>
    tpu.vector_store %arg10[%c12, %c0_140], %216 {strides = array<i32>} : memref<20x512xf32, #tpu.memory_space<vmem>>, vector<8x512xf32>,
    return
  }
}

</mosaic_0001>

<bundles_post_ra>
// kernel: dense_block_forward.1
= control target key start
LH: loop header
LB: loop body
LE: loop exit
PB: predicated region body
PF: predicated region fallthrough
CT: control target
= control target key end

     0   :  { %vm52_vm0 = vcmask 1043456   ;;  %v3271_v32 = vmov 0   ;;  %s3274_s16 = smov 15   ;;  %s3275_s17 = smov 1   ;;  %v122_v55 = vlaneseq  ;;  %vm164_vm2 = vcmask 1041408   ;;  %s4263_s0 = inlined_call_operand.vmem [shape: f32[4,512], index: 0, kind: input, shape index: {}]   ;;  %s4264_s10 = inlined_call_operand.vmem [shape: f32[20,512], index: 10, kind: output, shape index: {}]   ;;  %s4265_s2 = inlined_call_operand.vmem [shape: f32[4,1], index: 2, kind: input, shape index: {}]   ;;  %s4266_s3 = inlined_call_operand.vmem [shape: f32[4,1], index: 3, kind: input, shape index: {}]   ;;  %s4267_s5 = inlined_call_operand.vmem [shape: f32[8,1], index: 5, kind: input, shape index: {}]   ;;  %s4268_s1 = inlined_call_operand.vmem [shape: f32[9,512], index: 1, kind: input, shape index: {}]   ;;  %s4269_s4 = inlined_call_operand.vmem [shape: bf16[9,8,4], index: 4, kind: input, shape index: {}]   ;;  %s4270_s6 = inlined_call_operand.vmem [shape: f32[12,1], index: 6, kind: input, shape index: {}]   ;;  %s4271_s7 = inlined_call_operand.vmem [shape: f32[12,1], index: 7, kind: input, shape index: {}]   ;;  %s4272_s9 = inlined_call_operand.vmem [shape: f32[8,1], index: 9, kind: input, shape index: {}]   ;;  %s4273_s8 = inlined_call_operand.vmem [shape: bf16[9,8,12], index: 8, kind: input, shape index: {}]  }
   0x1   :  { %v36_v0 = vld [vmem:[%s4263_s0] sm:$0xff]  ;;  %v37_v1 = vld [vmem:[%s4263_s0 + $0x8] sm:$0xff]  ;;  %3261 = vset.pattern.permute.xlu1 %v3271_v32  ;;  %209 = vmatprep.mubr.bf16.mxu0 %v3271_v32  ;;  %s3276_s18 = smov 127   ;;  %s3277_s19 = smov 113   ;;  %vm160_vm3 = vcmask 31744   ;;  %vm1625_vm11 = vcmask 1045504  }
   0x2   :  { %v40_v2 = vcombine.high %v36_v0, %v36_v0  ;;  %v41_v3 = vcombine.high %v37_v1, %v37_v1  ;;  %44 = vst [vmem:[%s4264_s10] sm:$0xf] %v36_v0  ;;  %46 = vst [vmem:[%s4264_s10 + $0x10] sm:$0xf] %v37_v1  ;;  %250 = vmatprep.mubr.bf16.mxu1 %v3271_v32  ;;  %3262 = vset.pattern.permute.xlu0 %v3271_v32  ;;  %v81_v36 = vld [vmem:[%s4265_s2] sm:$0xf]  ;;  %s3272_s2 = smov 17  }
   0x3   :  { %v94_v39 = vld [vmem:[%s4266_s3] sm:$0xf]  ;;  %s3273_s3 = smov 16   ;;  %s3278_s20 = smov 112   ;;  %v132_v56 = vshrl.u32 %v122_v55, 7  ;;  %v3458_v57 = vand.u32 127, %v122_v55 }
   0x4   :  { %45 = vst [vmem:[%s4264_s10 + $0x8] sm:$0xf] %v40_v2  ;;  %47 = vst [vmem:[%s4264_s10 + $0x18] sm:$0xf] %v41_v3  ;;  %s3279_s21 = smov 111   ;;  %v108_v54 = vld [vmem:[%s4267_s5] sm:$0xff] }
   0x5   :  { %v129_v58 = vld [vmem:[%s4268_s1] ss:$8 sm:$0xf]  ;;  %v3463_v59 = vsub.s32 1, %v132_v56  ;;  %vm124_vm1 = vcmp.lt.s32.totalorder %v3458_v57, 17  ;;  %v3467_v62 = vsub.s32 0, %v132_v56 }
   0x6   :  { %v3472_v3 = vsub.s32 2, %v132_v56  ;;  %vm271_vm4 = vcmp.lt.s32.totalorder %v3458_v57, 16  ;;  %vm418_vm5 = vcmp.lt.s32.totalorder %v3458_v57, 15  ;;  %vm565_vm6 = vcmp.lt.s32.totalorder %v3458_v57, 1 }
   0x7   :  { %v138_v60 = vrot.slane %v129_v58, %v3463_v59  ;;  %v134_v2 = vrot.slane %v129_v58, %v3467_v62  ;;  %vm846_vm7 = vcmp.lt.s32.totalorder %v3458_v57, 127  ;;  %vm993_vm8 = vcmp.lt.s32.totalorder %v3458_v57, 113 }
   0x8   :  { %vm1140_vm9 = vcmp.lt.s32.totalorder %v3458_v57, 112  ;;  %vm1287_vm10 = vcmp.lt.s32.totalorder %v3458_v57, 111  ;;  %vm1621_vm12 = vcmask 97280   ;;  %v3111_v57 = vld [vmem:[%s4273_s8 + $0x20] sm:$0xf] }
   0x9   :  { %v48_v4 = vld [vmem:[%s4264_s10] sm:$0xf]  ;;  %v50_v5 = vld [vmem:[%s4264_s10 + $0x10] sm:$0xf] }
   0xa   :  { %v53_v6 = vsel %vm52_vm0, %v48_v4, 0.0  ;;  %v56_v10 = vsel %vm52_vm0, %v50_v5, 0.0 }
   0xb   :  { %v49_v7 = vld [vmem:[%s4264_s10 + $0x8] sm:$0xf]  ;;  %v51_v8 = vld [vmem:[%s4264_s10 + $0x18] sm:$0xf] }
   0xc   :  { %v54_v9 = vsel %vm52_vm0, %v49_v7, 0.0  ;;  %v58_v12 = vsel %vm52_vm0, %v51_v8, 0.0 }
   0xd   :  { %v55_v11 = vadd.f32 %v54_v9, %v53_v6 }
   0xf   :  { %v57_v13 = vadd.f32 %v56_v10, %v55_v11  ;;  %v142_v11 = vrot.slane %v129_v58, %v3472_v3 }
  0x11   :  { %v59_v14 = vadd.f32 %v58_v12, %v57_v13 }
  0x13   :  { %60 = vadd.xlane.f32.xlu0 %v59_v14 }
  0xa0   :  { %v61_v15 = vpop.xlane.xlu0 %60 }
  0xa1   :  { %v62_v16 = vmul.f32 0.001953125, %v61_v15 }
  0xa3   :  { %v63_v17 = vsub.f32 %v48_v4, %v62_v16  ;;  %v64_v18 = vsub.f32 %v49_v7, %v62_v16  ;;  %v65_v19 = vsub.f32 %v50_v5, %v62_v16  ;;  %v66_v20 = vsub.f32 %v51_v8, %v62_v16 }
  0xa4   :  { %v3474_v4 = vsub.s32 3, %v132_v56 }
  0xa5   :  { %v67_v21 = vmul.f32 %v63_v17, %v63_v17  ;;  %v68_v22 = vmul.f32 %v64_v18, %v64_v18  ;;  %v69_v23 = vmul.f32 %v65_v19, %v65_v19  ;;  %v70_v24 = vmul.f32 %v66_v20, %v66_v20 }
  0xa6   :  { %v146_v10 = vrot.slane %v129_v58, %v3474_v4 }
  0xa7   :  { %v71_v25 = vsel %vm52_vm0, %v67_v21, 0.0  ;;  %v72_v26 = vsel %vm52_vm0, %v68_v22, 0.0  ;;  %v74_v28 = vsel %vm52_vm0, %v69_v23, 0.0  ;;  %v76_v30 = vsel %vm52_vm0, %v70_v24, 0.0  ;;  %v159_v21 = vld [vmem:[%s4269_s4] sm:$0xf] }
  0xa8   :  { %v73_v27 = vadd.f32 %v72_v26, %v71_v25 }
  0xaa   :  { %v75_v29 = vadd.f32 %v74_v28, %v73_v27 }
  0xac   :  { %v77_v31 = vadd.f32 %v76_v30, %v75_v29 }
  0xae   :  { %78 = vadd.xlane.f32.xlu0 %v77_v31 }
 0x13b   :  { %v79_v33 = vpop.xlane.xlu0 %78 }
 0x13c   :  { %v80_v34 = vmul.f32 0.001953125, %v79_v33  ;;  %v3022_v33 = vld [vmem:[%s4268_s1 + $0x2] ss:$8 sm:$0xf] }
 0x13d   :  { %v429_v58 = vrot.slane %v3022_v33, %v3467_v62 }
 0x13e   :  { %v82_v35 = vadd.f32 1e-05, %v80_v34 }
 0x140   :  { %3265 = vrsqrt.f32 %v82_v35 }
 0x14a   :  { %v3266_v37 = vpop.eup %3265 }
 0x14b   :  { %v84_v38 = vmul.f32 %v3266_v37, %v81_v36 }
 0x14d   :  { %87 = vperm.xlu1 %3261, %v84_v38  }
 0x151   :  { %97 = vperm.xlu1 %3261, %v94_v39  }
 0x1cc   :  { %v88_v40 = vpop.permute.xlu1 %87 }
 0x1cd   :  { %v90_v41 = vmul.f32 %v88_v40, %v63_v17  ;;  %v91_v42 = vmul.f32 %v88_v40, %v64_v18  ;;  %v92_v44 = vmul.f32 %v88_v40, %v65_v19  ;;  %v93_v45 = vmul.f32 %v88_v40, %v66_v20  ;;  %v3016_v20 = vld [vmem:[%s4268_s1 + $0x1] ss:$8 sm:$0xf] }
 0x1ce   :  { %v286_v26 = vrot.slane %v3016_v20, %v3463_v59  ;;  %v290_v27 = vrot.slane %v3016_v20, %v3472_v3  ;;  %v282_v36 = vrot.slane %v3016_v20, %v3467_v62  ;;  %v294_v37 = vrot.slane %v3016_v20, %v3474_v4 }
 0x1cf   :  { %v437_v40 = vrot.slane %v3022_v33, %v3472_v3 }
 0x1d0   :  { %v98_v43 = vpop.permute.xlu1 %97 }
 0x1d1   :  { %v100_v46 = vadd.f32 %v98_v43, %v90_v41  ;;  %v101_v47 = vadd.f32 %v98_v43, %v91_v42  ;;  %v102_v48 = vadd.f32 %v98_v43, %v92_v44  ;;  %v103_v49 = vadd.f32 %v98_v43, %v93_v45 }
 0x1d3   :  { %v3383_v50 = vmax.f32 %v100_v46, 0.0  ;;  %v3385_v51 = vmax.f32 %v101_v47, 0.0  ;;  %v3391_v52 = vmax.f32 %v102_v48, 0.0  ;;  %v3393_v53 = vmax.f32 %v103_v49, 0.0 }
 0x1d4   :  { %v433_v46 = vrot.slane %v3022_v33, %v3463_v59 }
 0x1d5   :  { %116 = vrot.lane.b32.xlu1 %v3385_v51, %s3272_s2  ;;  %114 = vrot.lane.b32.xlu0 %v3383_v50, %s3272_s2 }
 0x1d9   :  { %120 = vrot.lane.b32.xlu1 %v3393_v53, %s3272_s2  ;;  %267 = vrot.lane.b32.xlu0 %v3391_v52, %s3273_s3 }
 0x1dd   :  { %118 = vrot.lane.b32.xlu1 %v3391_v52, %s3272_s2  ;;  %412 = vrot.lane.b32.xlu0 %v3385_v51, %s3274_s16 }
 0x1e1   :  { %263 = vrot.lane.b32.xlu1 %v3383_v50, %s3273_s3  ;;  %414 = vrot.lane.b32.xlu0 %v3391_v52, %s3274_s16 }
 0x1e5   :  { %265 = vrot.lane.b32.xlu1 %v3385_v51, %s3273_s3  ;;  %559 = vrot.lane.b32.xlu0 %v3385_v51, %s3275_s17 }
 0x1e9   :  { %269 = vrot.lane.b32.xlu1 %v3393_v53, %s3273_s3  ;;  %561 = vrot.lane.b32.xlu0 %v3391_v52, %s3275_s17 }
 0x1ed   :  { %410 = vrot.lane.b32.xlu1 %v3383_v50, %s3274_s16  ;;  %840 = vrot.lane.b32.xlu0 %v3385_v51, %s3276_s18 }
 0x1f1   :  { %416 = vrot.lane.b32.xlu1 %v3393_v53, %s3274_s16  ;;  %844 = vrot.lane.b32.xlu0 %v3393_v53, %s3276_s18 }
 0x1f5   :  { %557 = vrot.lane.b32.xlu1 %v3383_v50, %s3275_s17  ;;  %987 = vrot.lane.b32.xlu0 %v3385_v51, %s3277_s19 }
 0x1f9   :  { %563 = vrot.lane.b32.xlu1 %v3393_v53, %s3275_s17  ;;  %991 = vrot.lane.b32.xlu0 %v3393_v53, %s3277_s19 }
 0x1fd   :  { %838 = vrot.lane.b32.xlu1 %v3383_v50, %s3276_s18  ;;  %1134 = vrot.lane.b32.xlu0 %v3385_v51, %s3278_s20 }
 0x201   :  { %842 = vrot.lane.b32.xlu1 %v3391_v52, %s3276_s18  ;;  %1138 = vrot.lane.b32.xlu0 %v3393_v53, %s3278_s20 }
 0x205   :  { %985 = vrot.lane.b32.xlu1 %v3383_v50, %s3277_s19  ;;  %1281 = vrot.lane.b32.xlu0 %v3385_v51, %s3279_s21 }
 0x209   :  { %989 = vrot.lane.b32.xlu1 %v3391_v52, %s3277_s19  ;;  %1285 = vrot.lane.b32.xlu0 %v3393_v53, %s3279_s21 }
 0x20d   :  { %1132 = vrot.lane.b32.xlu1 %v3383_v50, %s3278_s20 }
 0x211   :  { %1136 = vrot.lane.b32.xlu1 %v3391_v52, %s3278_s20 }
 0x215   :  { %1279 = vrot.lane.b32.xlu1 %v3383_v50, %s3279_s21 }
 0x219   :  { %1283 = vrot.lane.b32.xlu1 %v3391_v52, %s3279_s21 }
 0x21d   :  { %111 = vperm.xlu1 %3261, %v108_v54  }
 0x247   :  { %v117_v61 = vpop.permute.xlu1 %116  ;;  %v115_v63 = vpop.permute.xlu0 %114 }
 0x248   :  { %v127_v0 = vsel %vm124_vm1, %v115_v63, %v117_v61 }
 0x249   :  { %v152_v1 = vmul.f32 %v138_v60, %v127_v0  ;;  %v441_v60 = vrot.slane %v3022_v33, %v3474_v4 }
 0x24b   :  { %v121_v5 = vpop.permute.xlu1 %120  ;;  %v156_v6 = vpack.c.bf16 %v152_v1, %v152_v1  ;;  %v268_v8 = vpop.permute.xlu0 %267 }
 0x24c   :  { %v128_v7 = vsel %vm124_vm1, %v121_v5, %v115_v63 }
 0x24d   :  { %3012 = vmatprep.subr.msk.bf16.mxu0 %vm164_vm2, %v156_v6  ;;  %v151_v9 = vmul.f32 %v134_v2, %v128_v7  ;;  %v3017_v2 = vld [vmem:[%s4269_s4 + $0x4] sm:$0xf] }
 0x24f   :  { %v119_v12 = vpop.permute.xlu1 %118  ;;  %v155_v13 = vpack.c.bf16 %v151_v9, %v151_v9  ;;  %v413_v19 = vpop.permute.xlu0 %412 }
 0x250   :  { %v126_v14 = vsel %vm124_vm1, %v117_v61, %v119_v12  ;;  %v125_v15 = vsel %vm124_vm1, %v119_v12, %v121_v5  ;;  %v3028_v5 = vld [vmem:[%s4268_s1 + $0x3] ss:$8 sm:$0xf] }
 0x251   :  { %v166_v16 = vsel %vm164_vm2, %v155_v13, 0  ;;  %v154_v17 = vmul.f32 %v146_v10, %v125_v15  ;;  %v153_v18 = vmul.f32 %v142_v11, %v126_v14  ;;  %v580_v11 = vrot.slane %v3028_v5, %v3463_v59  ;;  %v3034_v15 = vld [vmem:[%s4268_s1 + $0x4] ss:$8 sm:$0xf] }
 0x252   :  { %178 = vmatpush1.bf16.msra.mxu0 %v166_v16  ;;  %v584_v16 = vrot.slane %v3028_v5, %v3472_v3 }
 0x253   :  { %v264_v22 = vpop.permute.xlu1 %263  ;;  %v158_v23 = vpack.c.bf16 %v154_v17, %v154_v17  ;;  %v157_v24 = vpack.c.bf16 %v153_v18, %v153_v18  ;;  %v415_v29 = vpop.permute.xlu0 %414 }
 0x254   :  { %v420_v47 = vsel %vm418_vm5, %v413_v19, %v415_v29 }
 0x255   :  { %3014 = vmatprep.subr.msk.bf16.mxu1 %vm164_vm2, %v158_v23  ;;  %v172_v25 = vsel %vm164_vm2, %v157_v24, 0  ;;  %3013 = vmatmul.mubr.msk.bf16.vlgmr.msra.gmra.mrb[0].mxu0 %vm160_vm3, %v159_v21  ;;  %v448_v61 = vmul.f32 %v437_v40, %v420_v47  ;;  %v714_v23 = vrot.slane %v3034_v15, %v3463_v59  ;;  %v718_v47 = vrot.slane %v3034_v15, %v3472_v3 }
 0x256   :  { %219 = vmatpush1.bf16.msra.mxu1 %v172_v25  ;;  %356 = vmatprep.mubr.bf16.mxu0 %v3271_v32 }
 0x257   :  { %v266_v28 = vpop.permute.xlu1 %265  ;;  %v560_v48 = vpop.permute.xlu0 %559  ;;  %v452_v12 = vpack.c.bf16 %v448_v61, %v448_v61  ;;  %v729_v61 = vmul.f32 %v718_v47, %v3391_v52 }
 0x258   :  { %v273_v30 = vsel %vm271_vm4, %v266_v28, %v268_v8  ;;  %v274_v31 = vsel %vm271_vm4, %v264_v22, %v266_v28 }
 0x259   :  { %v300_v34 = vmul.f32 %v286_v26, %v274_v31  ;;  %v301_v35 = vmul.f32 %v290_v27, %v273_v30  ;;  %3015 = vmatmul.mubr.msk.bf16.vlgmr.msra.gmra.mrb[0].mxu1 %vm160_vm3, %v159_v21  ;;  %v466_v26 = vsel %vm164_vm2, %v452_v12, 0  ;;  %v588_v27 = vrot.slane %v3028_v5, %v3474_v4 }
 0x25a   :  { %397 = vmatprep.mubr.bf16.mxu1 %v3271_v32 }
 0x25b   :  { %v304_v38 = vpack.c.bf16 %v300_v34, %v300_v34  ;;  %v270_v39 = vpop.permute.xlu1 %269  ;;  %v305_v43 = vpack.c.bf16 %v301_v35, %v301_v35 }
 0x25c   :  { %v272_v41 = vsel %vm271_vm4, %v268_v8, %v270_v39  ;;  %v275_v42 = vsel %vm271_vm4, %v270_v39, %v264_v22  ;;  %v562_v8 = vpop.permute.xlu0 %561  ;;  %v576_v22 = vrot.slane %v3028_v5, %v3467_v62  ;;  %v3023_v39 = vld [vmem:[%s4269_s4 + $0x8] sm:$0xf] }
 0x25d   :  { %v299_v44 = vmul.f32 %v282_v36, %v275_v42  ;;  %v302_v45 = vmul.f32 %v294_v37, %v272_v41  ;;  %3018 = vmatprep.subr.msk.bf16.mxu0 %vm164_vm2, %v304_v38  ;;  %v319_v1 = vsel %vm164_vm2, %v305_v43, 0  ;;  %v567_v17 = vsel %vm565_vm6, %v560_v48, %v562_v8 }
 0x25e   :  { %v595_v28 = vmul.f32 %v584_v16, %v567_v17  ;;  %v728_v37 = vmul.f32 %v714_v23, %v3385_v51  ;;  %v3046_v16 = vld [vmem:[%s4268_s1 + $0x6] ss:$8 sm:$0xf] }
 0x25f   :  { %v303_v49 = vpack.c.bf16 %v299_v44, %v299_v44  ;;  %v306_v54 = vpack.c.bf16 %v302_v45, %v302_v45  ;;  %v411_v55 = vpop.permute.xlu1 %410  ;;  %v710_v45 = vrot.slane %v3034_v15, %v3467_v62 }
 0x260   :  { %v421_v56 = vsel %vm418_vm5, %v411_v55, %v413_v19  ;;  %v599_v38 = vpack.c.bf16 %v595_v28, %v595_v28  ;;  %v841_v41 = vpop.permute.xlu0 %840  ;;  %v732_v51 = vpack.c.bf16 %v728_v37, %v728_v37 }
 0x261   :  { %v447_v63 = vmul.f32 %v433_v46, %v421_v56  ;;  %3020 = vmatprep.subr.msk.bf16.mxu1 %vm164_vm2, %v306_v54  ;;  %v313_v0 = vsel %vm164_vm2, %v303_v49, 0 }
 0x262   :  { %325 = vmatpush1.bf16.msra.mxu0 %v313_v0  ;;  %366 = vmatpush1.bf16.msra.mxu1 %v319_v1 }
 0x263   :  { %v451_v6 = vpack.c.bf16 %v447_v63, %v447_v63  ;;  %v417_v7 = vpop.permute.xlu1 %416 }
 0x264   :  { %v419_v9 = vsel %vm418_vm5, %v415_v29, %v417_v7  ;;  %v422_v10 = vsel %vm418_vm5, %v417_v7, %v411_v55  ;;  %v722_v29 = vrot.slane %v3034_v15, %v3474_v4  ;;  %v727_v55 = vmul.f32 %v710_v45, %v3383_v50  ;;  %v845_v56 = vpop.permute.xlu0 %844  ;;  %v3029_v7 = vld [vmem:[%s4269_s4 + $0xc] sm:$0xf] }
 0x265   :  { %v446_v13 = vmul.f32 %v429_v58, %v422_v10  ;;  %v449_v14 = vmul.f32 %v441_v60, %v419_v9  ;;  %3019 = vmatmul.mubr.msk.bf16.vlgmr.msra.gmra.mrb[0].mxu0 %vm160_vm3, %v3017_v2  ;;  %3021 = vmatmul.mubr.msk.bf16.vlgmr.msra.gmra.mrb[0].mxu1 %vm160_vm3, %v3017_v2  ;;  %v733_v50 = vpack.c.bf16 %v729_v61, %v729_v61 }
 0x266   :  { %3024 = vmatprep.subr.msk.bf16.mxu0 %vm164_vm2, %v451_v6  ;;  %503 = vmatprep.mubr.bf16.mxu0 %v3271_v32  ;;  %v730_v40 = vmul.f32 %v722_v29, %v3393_v53  ;;  %v613_v53 = vsel %vm164_vm2, %v599_v38, 0  ;;  %v731_v1 = vpack.c.bf16 %v727_v55, %v727_v55 }
 0x267   :  { %v450_v18 = vpack.c.bf16 %v446_v13, %v446_v13  ;;  %v453_v19 = vpack.c.bf16 %v449_v14, %v449_v14  ;;  %v558_v20 = vpop.permute.xlu1 %557  ;;  %544 = vmatprep.mubr.bf16.mxu1 %v3271_v32  ;;  %v747_v13 = vsel %vm164_vm2, %v733_v50, 0 }
 0x268   :  { %v568_v21 = vsel %vm565_vm6, %v558_v20, %v560_v48  ;;  %v3040_v48 = vld [vmem:[%s4268_s1 + $0x5] ss:$8 sm:$0xf]  ;;  %v734_v49 = vpack.c.bf16 %v730_v40, %v730_v40  ;;  %v741_v52 = vsel %vm164_vm2, %v731_v1, 0 }
 0x269   :  { %v594_v24 = vmul.f32 %v580_v11, %v568_v21  ;;  %3026 = vmatprep.subr.msk.bf16.mxu1 %vm164_vm2, %v453_v19  ;;  %v460_v25 = vsel %vm164_vm2, %v450_v18, 0  ;;  %v869_v58 = vrot.slane %v3040_v48, %v3474_v4  ;;  %v861_v60 = vrot.slane %v3040_v48, %v3463_v59 }
 0x26a   :  { %472 = vmatpush1.bf16.msra.mxu0 %v460_v25  ;;  %513 = vmatpush1.bf16.msra.mxu1 %v466_v26  ;;  %v857_v9 = vrot.slane %v3040_v48, %v3467_v62  ;;  %v865_v11 = vrot.slane %v3040_v48, %v3472_v3  ;;  %v1016_v21 = vrot.slane %v3046_v16, %v3474_v4 }
 0x26b   :  { %v598_v30 = vpack.c.bf16 %v594_v24, %v594_v24  ;;  %v564_v31 = vpop.permute.xlu1 %563 }
 0x26c   :  { %v566_v33 = vsel %vm565_vm6, %v562_v8, %v564_v31  ;;  %v569_v34 = vsel %vm565_vm6, %v564_v31, %v558_v20  ;;  %v988_v8 = vpop.permute.xlu0 %987 }
 0x26d   :  { %v593_v35 = vmul.f32 %v576_v22, %v569_v34  ;;  %v596_v36 = vmul.f32 %v588_v27, %v566_v33  ;;  %3030 = vmatprep.subr.msk.bf16.mxu0 %vm164_vm2, %v598_v30  ;;  %v1008_v22 = vrot.slane %v3046_v16, %v3463_v59  ;;  %v3035_v30 = vld [vmem:[%s4269_s4 + $0x10] sm:$0xf]  ;;  %v1004_v33 = vrot.slane %v3046_v16, %v3467_v62 }
 0x26e   :  { %v1012_v34 = vrot.slane %v3046_v16, %v3472_v3 }
 0x26f   :  { %v597_v42 = vpack.c.bf16 %v593_v35, %v593_v35  ;;  %v600_v43 = vpack.c.bf16 %v596_v36, %v596_v36  ;;  %v839_v44 = vpop.permute.xlu1 %838 }
 0x270   :  { %v850_v63 = vsel %vm846_vm7, %v845_v56, %v839_v44  ;;  %v849_v14 = vsel %vm846_vm7, %v839_v44, %v841_v41  ;;  %v992_v18 = vpop.permute.xlu0 %991 }
 0x271   :  { %3025 = vmatmul.mubr.msk.bf16.vlgmr.msra.gmra.mrb[0].mxu0 %vm160_vm3, %v3023_v39  ;;  %3027 = vmatmul.mubr.msk.bf16.vlgmr.msra.gmra.mrb[0].mxu1 %vm160_vm3, %v3023_v39  ;;  %v607_v46 = vsel %vm164_vm2, %v597_v42, 0  ;;  %v877_v2 = vmul.f32 %v869_v58, %v850_v63  ;;  %v874_v19 = vmul.f32 %v857_v9, %v849_v14  ;;  %v3041_v58 = vld [vmem:[%s4269_s4 + $0x14] sm:$0xf] }
 0x272   :  { %3032 = vmatprep.subr.msk.bf16.mxu1 %vm164_vm2, %v600_v43  ;;  %619 = vmatpush1.bf16.msra.mxu0 %v607_v46 }
 0x273   :  { %660 = vmatpush1.bf16.msra.mxu1 %v613_v53  ;;  %v843_v54 = vpop.permute.xlu1 %842  ;;  %3036 = vmatprep.subr.msk.bf16.mxu0 %vm164_vm2, %v732_v51  ;;  %v881_v10 = vpack.c.bf16 %v877_v2, %v877_v2  ;;  %v878_v25 = vpack.c.bf16 %v874_v19, %v874_v19  ;;  %v3047_v19 = vld [vmem:[%s4269_s4 + $0x18] sm:$0xf] }
 0x274   :  { %3038 = vmatprep.subr.msk.bf16.mxu1 %vm164_vm2, %v734_v49  ;;  %650 = vmatprep.mubr.bf16.mxu0 %v3271_v32  ;;  %v848_v0 = vsel %vm846_vm7, %v841_v41, %v843_v54  ;;  %v847_v15 = vsel %vm846_vm7, %v843_v54, %v845_v56  ;;  %v1135_v31 = vpop.permute.xlu0 %1134  ;;  %v3052_v41 = vld [vmem:[%s4268_s1 + $0x7] ss:$8 sm:$0xf] }
 0x275   :  { %691 = vmatprep.mubr.bf16.mxu1 %v3271_v32  ;;  %v875_v5 = vmul.f32 %v861_v60, %v848_v0  ;;  %v876_v20 = vmul.f32 %v865_v11, %v847_v15  ;;  %v888_v37 = vsel %vm164_vm2, %v878_v25, 0  ;;  %v1163_v46 = vrot.slane %v3052_v41, %v3474_v4 }
 0x276   :  { %v1155_v51 = vrot.slane %v3052_v41, %v3463_v59  ;;  %v1151_v61 = vrot.slane %v3052_v41, %v3467_v62  ;;  %v1159_v63 = vrot.slane %v3052_v41, %v3472_v3 }
 0x277   :  { %v986_v6 = vpop.permute.xlu1 %985  ;;  %v879_v12 = vpack.c.bf16 %v875_v5, %v875_v5  ;;  %v880_v26 = vpack.c.bf16 %v876_v20, %v876_v20 }
 0x278   :  { %v997_v23 = vsel %vm993_vm8, %v992_v18, %v986_v6  ;;  %v996_v39 = vsel %vm993_vm8, %v986_v6, %v988_v8  ;;  %v1139_v43 = vpop.permute.xlu0 %1138 }
 0x279   :  { %v1024_v27 = vmul.f32 %v1016_v21, %v997_v23  ;;  %v894_v38 = vsel %vm164_vm2, %v880_v26, 0  ;;  %v1021_v44 = vmul.f32 %v1004_v33, %v996_v39  ;;  %v3053_v33 = vld [vmem:[%s4269_s4 + $0x1c] sm:$0xf] }
 0x27b   :  { %v990_v17 = vpop.permute.xlu1 %989  ;;  %v1028_v35 = vpack.c.bf16 %v1024_v27, %v1024_v27  ;;  %v1025_v53 = vpack.c.bf16 %v1021_v44, %v1021_v44 }
 0x27c   :  { %v995_v24 = vsel %vm993_vm8, %v988_v8, %v990_v17  ;;  %v994_v40 = vsel %vm993_vm8, %v990_v17, %v992_v18  ;;  %v1282_v60 = vpop.permute.xlu0 %1281 }
 0x27d   :  { %3031 = vmatmul.mubr.msk.bf16.vlgmr.msra.gmra.mrb[0].mxu0 %vm160_vm3, %v3029_v7  ;;  %3033 = vmatmul.mubr.msk.bf16.vlgmr.msra.gmra.mrb[0].mxu1 %vm160_vm3, %v3029_v7  ;;  %v1022_v28 = vmul.f32 %v1008_v22, %v995_v24  ;;  %v1023_v45 = vmul.f32 %v1012_v34, %v994_v40  ;;  %v1035_v2 = vsel %vm164_vm2, %v1025_v53, 0  ;;  %v3058_v7 = vld [vmem:[%s4268_s1 + $0x20] ss:$8 sm:$0xf] }
 0x27e   :  { %753 = vmatpush1.bf16.msra.mxu0 %v741_v52  ;;  %794 = vmatpush1.bf16.msra.mxu1 %v747_v13  ;;  %v1310_v11 = vrot.slane %v3058_v7, %v3474_v4  ;;  %v1298_v20 = vrot.slane %v3058_v7, %v3467_v62  ;;  %v1306_v21 = vrot.slane %v3058_v7, %v3472_v3 }
 0x27f   :  { %3042 = vmatprep.subr.msk.bf16.mxu0 %vm164_vm2, %v879_v12  ;;  %3044 = vmatprep.subr.msk.bf16.mxu1 %vm164_vm2, %v881_v10  ;;  %v1133_v29 = vpop.permute.xlu1 %1132  ;;  %v1026_v36 = vpack.c.bf16 %v1022_v28, %v1022_v28  ;;  %v1027_v49 = vpack.c.bf16 %v1023_v45, %v1023_v45  ;;  %v1302_v12 = vrot.slane %v3058_v7, %v3463_v59 }
 0x280   :  { %784 = vmatprep.mubr.bf16.mxu0 %v3271_v32  ;;  %825 = vmatprep.mubr.bf16.mxu1 %v3271_v32  ;;  %v1144_v47 = vsel %vm1140_vm9, %v1139_v43, %v1133_v29  ;;  %v1143_v6 = vsel %vm1140_vm9, %v1133_v29, %v1135_v31  ;;  %v1286_v9 = vpop.permute.xlu0 %1285 }
 0x281   :  { %v1171_v54 = vmul.f32 %v1163_v46, %v1144_v47  ;;  %v1041_v5 = vsel %vm164_vm2, %v1027_v49, 0  ;;  %v1168_v52 = vmul.f32 %v1151_v61, %v1143_v6 }
 0x283   :  { %v1137_v42 = vpop.permute.xlu1 %1136  ;;  %v1175_v0 = vpack.c.bf16 %v1171_v54, %v1171_v54  ;;  %v1172_v15 = vpack.c.bf16 %v1168_v52, %v1168_v52 }
 0x284   :  { %v1142_v48 = vsel %vm1140_vm9, %v1135_v31, %v1137_v42  ;;  %v1141_v50 = vsel %vm1140_vm9, %v1137_v42, %v1139_v43 }
 0x285   :  { %v1169_v55 = vmul.f32 %v1155_v51, %v1142_v48  ;;  %v1170_v10 = vmul.f32 %v1159_v63, %v1141_v50  ;;  %v1182_v24 = vsel %vm164_vm2, %v1172_v15, 0 }
 0x287   :  { %v1280_v56 = vpop.permute.xlu1 %1279  ;;  %v1173_v1 = vpack.c.bf16 %v1169_v55, %v1169_v55  ;;  %v1174_v16 = vpack.c.bf16 %v1170_v10, %v1170_v10 }
 0x288   :  { %v1291_v13 = vsel %vm1287_vm10, %v1286_v9, %v1280_v56  ;;  %v1290_v26 = vsel %vm1287_vm10, %v1280_v56, %v1282_v60 }
 0x289   :  { %3037 = vmatmul.mubr.msk.bf16.vlgmr.msra.gmra.mrb[0].mxu0 %vm160_vm3, %v3035_v30  ;;  %3039 = vmatmul.mubr.msk.bf16.vlgmr.msra.gmra.mrb[0].mxu1 %vm160_vm3, %v3035_v30  ;;  %v1318_v17 = vmul.f32 %v1310_v11, %v1291_v13  ;;  %v1188_v25 = vsel %vm164_vm2, %v1174_v16, 0  ;;  %v1315_v28 = vmul.f32 %v1298_v20, %v1290_v26 }
 0x28a   :  { %900 = vmatpush1.bf16.msra.mxu0 %v888_v37  ;;  %941 = vmatpush1.bf16.msra.mxu1 %v894_v38 }
 0x28b   :  { %3048 = vmatprep.subr.msk.bf16.mxu0 %vm164_vm2, %v1026_v36  ;;  %3050 = vmatprep.subr.msk.bf16.mxu1 %vm164_vm2, %v1028_v35  ;;  %v1284_v8 = vpop.permute.xlu1 %1283  ;;  %v1322_v22 = vpack.c.bf16 %v1318_v17, %v1318_v17  ;;  %v1319_v30 = vpack.c.bf16 %v1315_v28, %v1315_v28  ;;  %v3059_v36 = vld [vmem:[%s4269_s4 + $0x20] sm:$0xf] }
 0x28c   :  { %931 = vmatprep.mubr.bf16.mxu0 %v3271_v32  ;;  %972 = vmatprep.mubr.bf16.mxu1 %v3271_v32  ;;  %v1289_v14 = vsel %vm1287_vm10, %v1282_v60, %v1284_v8  ;;  %v1288_v27 = vsel %vm1287_vm10, %v1284_v8, %v1286_v9 }
 0x28d   :  { %v1316_v18 = vmul.f32 %v1302_v12, %v1289_v14  ;;  %v1317_v29 = vmul.f32 %v1306_v21, %v1288_v27  ;;  %v1329_v34 = vsel %vm164_vm2, %v1319_v30, 0 }
 0x28f   :  { %v1320_v23 = vpack.c.bf16 %v1316_v18, %v1316_v18  ;;  %v1321_v31 = vpack.c.bf16 %v1317_v29, %v1317_v29 }
 0x291   :  { %v1335_v35 = vsel %vm164_vm2, %v1321_v31, 0 }
 0x295   :  { %3043 = vmatmul.mubr.msk.bf16.vlgmr.msra.gmra.mrb[0].mxu0 %vm160_vm3, %v3041_v58  ;;  %3045 = vmatmul.mubr.msk.bf16.vlgmr.msra.gmra.mrb[0].mxu1 %vm160_vm3, %v3041_v58 }
 0x296   :  { %1047 = vmatpush1.bf16.msra.mxu0 %v1035_v2  ;;  %1088 = vmatpush1.bf16.msra.mxu1 %v1041_v5 }
 0x297   :  { %3054 = vmatprep.subr.msk.bf16.mxu0 %vm164_vm2, %v1173_v1  ;;  %3056 = vmatprep.subr.msk.bf16.mxu1 %vm164_vm2, %v1175_v0 }
 0x298   :  { %1078 = vmatprep.mubr.bf16.mxu0 %v3271_v32  ;;  %1119 = vmatprep.mubr.bf16.mxu1 %v3271_v32 }
 0x29c   :  { %v112_v37 = vpop.permute.xlu1 %111 }
 0x2a1   :  { %3049 = vmatmul.mubr.msk.bf16.vlgmr.msra.gmra.mrb[0].mxu0 %vm160_vm3, %v3047_v19  ;;  %3051 = vmatmul.mubr.msk.bf16.vlgmr.msra.gmra.mrb[0].mxu1 %vm160_vm3, %v3047_v19 }
 0x2a2   :  { %1194 = vmatpush1.bf16.msra.mxu0 %v1182_v24  ;;  %1235 = vmatpush1.bf16.msra.mxu1 %v1188_v25 }
 0x2a3   :  { %3060 = vmatprep.subr.msk.bf16.mxu0 %vm164_vm2, %v1320_v23  ;;  %3062 = vmatprep.subr.msk.bf16.mxu1 %vm164_vm2, %v1322_v22 }
 0x2a4   :  { %1225 = vmatprep.mubr.bf16.mxu0 %v3271_v32  ;;  %1266 = vmatprep.mubr.bf16.mxu1 %v3271_v32 }
 0x2ad   :  { %3055 = vmatmul.mubr.msk.bf16.vlgmr.msra.gmra.mrb[0].mxu0 %vm160_vm3, %v3053_v33  ;;  %3057 = vmatmul.mubr.msk.bf16.vlgmr.msra.gmra.mrb[0].mxu1 %vm160_vm3, %v3053_v33 }
 0x2ae   :  { %1341 = vmatpush1.bf16.msra.mxu0 %v1329_v34  ;;  %1382 = vmatpush1.bf16.msra.mxu1 %v1335_v35 }
 0x2af   :  { %1372 = vmatprep.mubr.bf16.mxu0 %v3271_v32  ;;  %1413 = vmatprep.mubr.bf16.mxu1 %v3271_v32 }
 0x2b9   :  { %3061 = vmatmul.mubr.msk.bf16.vlgmr.msra.gmra.mrb[0].mxu0 %vm160_vm3, %v3059_v36  ;;  %3063 = vmatmul.mubr.msk.bf16.vlgmr.msra.gmra.mrb[0].mxu1 %vm160_vm3, %v3059_v36 }
 0x2ba   :  { %1670 = vmatprep.mubr.bf16.mxu0 %v3271_v32  ;;  %1711 = vmatprep.mubr.bf16.mxu1 %v3271_v32 }
 0x38c   :  { %v1374_v38 = vpop.f32.mrb[0].mxu0  ;;  %v1415_v39 = vpop.f32.mrb[0].mxu1 }
 0x38d   :  { %v3116_v40 = vadd.f32 %v1374_v38, %v112_v37  ;;  %v3118_v41 = vadd.f32 %v1415_v39, %v112_v37  ;;  %v1376_v42 = vpop.f32.mrb[1].mxu0  ;;  %v1417_v43 = vpop.f32.mrb[1].mxu1 }
 0x38e   :  { %v3117_v44 = vadd.f32 %v1376_v42, %v112_v37  ;;  %v3119_v45 = vadd.f32 %v1417_v43, %v112_v37  ;;  %v1378_v46 = vpop.f32.mrb[2].mxu0  ;;  %v1419_v51 = vpop.f32.mrb[2].mxu1 }
 0x38f   :  { %v1430_v47 = vrot.slane %v3116_v40, 4  ;;  %v1432_v48 = vrot.slane %v3118_v41, 4  ;;  %v1379_v53 = vpop.f32.mrb[3].mxu0  ;;  %v1420_v49 = vpop.f32.mrb[3].mxu1 }
 0x390   :  { %v1431_v54 = vrot.slane %v3117_v44, 4  ;;  %v1433_v55 = vrot.slane %v3119_v45, 4  ;;  %v1502_v53 = vld [vmem:[%s4270_s6] sm:$0xff] }
 0x391   :  { %1438 = vst [vmem:[%s4264_s10 + $0x20] ss:$-28 sps:$4 sm:$0xff] %v1430_v47   ;;  %1440 = vst [vmem:[%s4264_s10 + $0x30] ss:$-28 sps:$4 sm:$0xff] %v1432_v48  }
 0x392   :  { %1439 = vst [vmem:[%s4264_s10 + $0x28] ss:$-28 sps:$4 sm:$0xff] %v1431_v54   ;;  %1441 = vst [vmem:[%s4264_s10 + $0x38] ss:$-28 sps:$4 sm:$0xff] %v1433_v55   ;;  %v1503_v55 = vld [vmem:[%s4270_s6 + $0x8] sm:$0xf] }
 0x398   :  { %v1446_v56 = vld [vmem:[%s4264_s10] sm:$0xff]  ;;  %v1452_v1 = vld [vmem:[%s4264_s10 + $0x30] sm:$0xf] }
 0x399   :  { %v1450_v58 = vld [vmem:[%s4264_s10 + $0x20] sm:$0xf]  ;;  %v1447_v60 = vld [vmem:[%s4264_s10 + $0x8] sm:$0xff]  ;;  %v1448_v5 = vld [vmem:[%s4264_s10 + $0x10] sm:$0xff]  ;;  %v1462_v8 = vsel %vm52_vm0, %v1452_v1, 0.0 }
 0x39a   :  { %v1451_v61 = vld [vmem:[%s4264_s10 + $0x28] sm:$0xf]  ;;  %v1459_v63 = vsel %vm52_vm0, %v1450_v58, 0.0  ;;  %v1454_v0 = vadd.f32 %v1447_v60, %v1446_v56  ;;  %v1453_v6 = vld [vmem:[%s4264_s10 + $0x38] sm:$0xf] }
 0x39b   :  { %v1460_v2 = vsel %vm52_vm0, %v1451_v61, 0.0  ;;  %v1449_v9 = vld [vmem:[%s4264_s10 + $0x18] sm:$0xff]  ;;  %v1464_v11 = vsel %vm52_vm0, %v1453_v6, 0.0 }
 0x39c   :  { %v1461_v50 = vadd.f32 %v1460_v2, %v1459_v63  ;;  %v1455_v7 = vadd.f32 %v1454_v0, %v1448_v5 }
 0x39e   :  { %v1463_v52 = vadd.f32 %v1462_v8, %v1461_v50  ;;  %v1456_v10 = vadd.f32 %v1455_v7, %v1449_v9 }
 0x3a0   :  { %v1465_v12 = vadd.f32 %v1464_v11, %v1463_v52  ;;  %1457 = vadd.xlane.f32.xlu1 %v1456_v10 }
 0x3a2   :  { %1466 = vadd.xlane.f32.xlu0 %v1465_v12 }
 0x42d   :  { %v1458_v13 = vpop.xlane.xlu1 %1457 }
 0x42e   :  { %v1468_v14 = vmul.f32 0.001953125, %v1458_v13 }
 0x42f   :  { %v1467_v15 = vpop.xlane.xlu0 %1466 }
 0x430   :  { %v1469_v16 = vmul.f32 0.001953125, %v1467_v15  ;;  %v1470_v17 = vsub.f32 %v1446_v56, %v1468_v14  ;;  %v1471_v18 = vsub.f32 %v1447_v60, %v1468_v14  ;;  %v1472_v19 = vsub.f32 %v1448_v5, %v1468_v14 }
 0x431   :  { %v1473_v23 = vsub.f32 %v1449_v9, %v1468_v14 }
 0x432   :  { %v3746_v20 = vsub.f32 %v1450_v58, %v1469_v16  ;;  %v3748_v21 = vsub.f32 %v1451_v61, %v1469_v16  ;;  %v1476_v22 = vsub.f32 %v1452_v1, %v1469_v16  ;;  %v1478_v24 = vmul.f32 %v1470_v17, %v1470_v17  ;;  %v1528_v58 = vld [vmem:[%s4271_s7] sm:$0xff]  ;;  %v1529_v61 = vld [vmem:[%s4271_s7 + $0x8] sm:$0xf] }
 0x433   :  { %v1479_v25 = vmul.f32 %v1471_v18, %v1471_v18  ;;  %v1477_v26 = vsub.f32 %v1453_v6, %v1469_v16  ;;  %v1480_v30 = vmul.f32 %v1472_v19, %v1472_v19  ;;  %v1481_v35 = vmul.f32 %v1473_v23, %v1473_v23 }
 0x434   :  { %v1482_v27 = vmul.f32 %v3746_v20, %v3746_v20  ;;  %v1483_v28 = vmul.f32 %v3748_v21, %v3748_v21  ;;  %v1484_v29 = vmul.f32 %v1476_v22, %v1476_v22 }
 0x435   :  { %v1486_v31 = vadd.f32 %v1479_v25, %v1478_v24  ;;  %v1485_v38 = vmul.f32 %v1477_v26, %v1477_v26 }
 0x436   :  { %v1491_v33 = vsel %vm52_vm0, %v1482_v27, 0.0  ;;  %v1492_v34 = vsel %vm52_vm0, %v1483_v28, 0.0  ;;  %v1494_v39 = vsel %vm52_vm0, %v1484_v29, 0.0 }
 0x437   :  { %v1487_v36 = vadd.f32 %v1486_v31, %v1480_v30  ;;  %v1493_v37 = vadd.f32 %v1492_v34, %v1491_v33  ;;  %v1496_v42 = vsel %vm52_vm0, %v1485_v38, 0.0  ;;  %v1586_v33 = vld [vmem:[%s4268_s1] ss:$8 sm:$0xf] }
 0x438   :  { %v1603_v34 = vrot.slane %v1586_v33, %v3474_v4 }
 0x439   :  { %v1488_v40 = vadd.f32 %v1487_v36, %v1481_v35  ;;  %v1495_v41 = vadd.f32 %v1494_v39, %v1493_v37 }
 0x43b   :  { %1489 = vadd.xlane.f32.xlu0 %v1488_v40  ;;  %v1497_v43 = vadd.f32 %v1496_v42, %v1495_v41 }
 0x43f   :  { %1498 = vadd.xlane.f32.xlu0 %v1497_v43 }
 0x4c8   :  { %v1490_v44 = vpop.xlane.xlu0 %1489 }
 0x4c9   :  { %v1500_v45 = vmul.f32 0.001953125, %v1490_v44  ;;  %v1556_v44 = vld [vmem:[%s4272_s9] sm:$0xff] }
 0x4cb   :  { %v1504_v46 = vadd.f32 1e-05, %v1500_v45 }
 0x4cc   :  { %v1499_v51 = vpop.xlane.xlu0 %1498 }
 0x4cd   :  { %3267 = vrsqrt.f32 %v1504_v46  ;;  %v1501_v47 = vmul.f32 0.001953125, %v1499_v51 }
 0x4cf   :  { %v1505_v48 = vadd.f32 1e-05, %v1501_v47 }
 0x4d1   :  { %3269 = vrsqrt.f32 %v1505_v48 }
 0x4d7   :  { %v3268_v49 = vpop.eup %3267 }
 0x4d8   :  { %v1508_v54 = vmul.f32 %v3268_v49, %v1502_v53  ;;  %v3068_v49 = vld [vmem:[%s4268_s1 + $0x1] ss:$8 sm:$0xf] }
 0x4da   :  { %1512 = vperm.xlu1 %3261, %v1508_v54   ;;  %v1595_v54 = vrot.slane %v1586_v33, %v3463_v59 }
 0x4db   :  { %v3270_v56 = vpop.eup %3269 }
 0x4dc   :  { %v1509_v60 = vmul.f32 %v3270_v56, %v1503_v55  ;;  %v1599_v56 = vrot.slane %v1586_v33, %v3472_v3 }
 0x4de   :  { %1532 = vperm.xlu1 %3261, %v1528_v58   ;;  %1517 = vperm.xlu0 %3262, %v1509_v60   ;;  %v1591_v58 = vrot.slane %v1586_v33, %v3467_v62 }
 0x4e2   :  { %1537 = vperm.xlu1 %3261, %v1529_v61  }
 0x559   :  { %v1513_v63 = vpop.permute.xlu1 %1512 }
 0x55a   :  { %v1520_v0 = vmul.f32 %v1513_v63, %v1470_v17  ;;  %v1521_v5 = vmul.f32 %v1513_v63, %v1471_v18  ;;  %v1522_v52 = vmul.f32 %v1513_v63, %v1472_v19  ;;  %v1523_v16 = vmul.f32 %v1513_v63, %v1473_v23 }
 0x55b   :  { %v1757_v63 = vrot.slane %v3068_v49, %v3463_v59 }
 0x55d   :  { %v1533_v1 = vpop.permute.xlu1 %1532  ;;  %v1518_v2 = vpop.permute.xlu0 %1517 }
 0x55e   :  { %v1540_v6 = vadd.f32 %v1533_v1, %v1520_v0  ;;  %v1541_v50 = vadd.f32 %v1533_v1, %v1521_v5  ;;  %v1526_v8 = vmul.f32 %v1518_v2, %v1476_v22  ;;  %v1527_v10 = vmul.f32 %v1518_v2, %v1477_v26 }
 0x55f   :  { %v1542_v12 = vadd.f32 %v1533_v1, %v1522_v52  ;;  %v1524_v17 = vmul.f32 %v1518_v2, %v3746_v20  ;;  %v1543_v18 = vadd.f32 %v1533_v1, %v1523_v16  ;;  %v1525_v25 = vmul.f32 %v1518_v2, %v3748_v21 }
 0x560   :  { %v3770_v7 = vmax.f32 %v1540_v6, 0.0  ;;  %v3774_v13 = vmax.f32 %v1541_v50, 0.0  ;;  %v1761_v0 = vrot.slane %v3068_v49, %v3472_v3  ;;  %v1753_v6 = vrot.slane %v3068_v49, %v3467_v62 }
 0x561   :  { %v1538_v9 = vpop.permute.xlu1 %1537  ;;  %v3783_v19 = vmax.f32 %v1542_v12, 0.0  ;;  %v3792_v20 = vmax.f32 %v1543_v18, 0.0  ;;  %v1765_v50 = vrot.slane %v3068_v49, %v3474_v4 }
 0x562   :  { %v1546_v11 = vadd.f32 %v1538_v9, %v1526_v8  ;;  %1562 = vrot.lane.b32.xlu1 %v3770_v7, %s3272_s2  ;;  %v1547_v14 = vadd.f32 %v1538_v9, %v1527_v10  ;;  %v1544_v22 = vadd.f32 %v1538_v9, %v1524_v17  ;;  %v1545_v23 = vadd.f32 %v1538_v9, %v1525_v25 }
 0x564   :  { %v3776_v15 = vmax.f32 %v1546_v11, 0.0  ;;  %v3785_v24 = vmax.f32 %v1547_v14, 0.0  ;;  %v3794_v26 = vmax.f32 %v1544_v22, 0.0  ;;  %v3800_v27 = vmax.f32 %v1545_v23, 0.0 }
 0x566   :  { %1566 = vrot.lane.b32.xlu1 %v3774_v13, %s3272_s2  ;;  %1572 = vrot.lane.b32.xlu0 %v3776_v15, %s3272_s2 }
 0x56a   :  { %1570 = vrot.lane.b32.xlu1 %v3783_v19, %s3272_s2  ;;  %1576 = vrot.lane.b32.xlu0 %v3785_v24, %s3272_s2 }
 0x56e   :  { %1574 = vrot.lane.b32.xlu1 %v3792_v20, %s3272_s2  ;;  %1726 = vrot.lane.b32.xlu0 %v3794_v26, %s3273_s3 }
 0x572   :  { %1724 = vrot.lane.b32.xlu1 %v3770_v7, %s3273_s3  ;;  %1730 = vrot.lane.b32.xlu0 %v3800_v27, %s3273_s3 }
 0x576   :  { %1728 = vrot.lane.b32.xlu1 %v3774_v13, %s3273_s3  ;;  %1734 = vrot.lane.b32.xlu0 %v3776_v15, %s3273_s3 }
 0x57a   :  { %1732 = vrot.lane.b32.xlu1 %v3783_v19, %s3273_s3  ;;  %1738 = vrot.lane.b32.xlu0 %v3785_v24, %s3273_s3 }
 0x57e   :  { %1736 = vrot.lane.b32.xlu1 %v3792_v20, %s3273_s3  ;;  %1887 = vrot.lane.b32.xlu0 %v3794_v26, %s3274_s16 }
 0x582   :  { %1891 = vrot.lane.b32.xlu0 %v3800_v27, %s3274_s16  ;;  %1564 = vrot.lane.b32.xlu1 %v3794_v26, %s3272_s2 }
 0x586   :  { %1895 = vrot.lane.b32.xlu0 %v3776_v15, %s3274_s16  ;;  %1568 = vrot.lane.b32.xlu1 %v3800_v27, %s3272_s2 }
 0x58a   :  { %1899 = vrot.lane.b32.xlu0 %v3785_v24, %s3274_s16  ;;  %1885 = vrot.lane.b32.xlu1 %v3770_v7, %s3274_s16 }
 0x58e   :  { %2048 = vrot.lane.b32.xlu0 %v3794_v26, %s3275_s17  ;;  %1889 = vrot.lane.b32.xlu1 %v3774_v13, %s3274_s16 }
 0x592   :  { %2052 = vrot.lane.b32.xlu0 %v3800_v27, %s3275_s17  ;;  %1893 = vrot.lane.b32.xlu1 %v3783_v19, %s3274_s16 }
 0x596   :  { %2056 = vrot.lane.b32.xlu0 %v3776_v15, %s3275_s17  ;;  %1897 = vrot.lane.b32.xlu1 %v3792_v20, %s3274_s16 }
 0x59a   :  { %2060 = vrot.lane.b32.xlu0 %v3785_v24, %s3275_s17  ;;  %2046 = vrot.lane.b32.xlu1 %v3770_v7, %s3275_s17 }
 0x59e   :  { %2346 = vrot.lane.b32.xlu0 %v3794_v26, %s3276_s18  ;;  %2050 = vrot.lane.b32.xlu1 %v3774_v13, %s3275_s17 }
 0x5a2   :  { %2350 = vrot.lane.b32.xlu0 %v3800_v27, %s3276_s18  ;;  %2054 = vrot.lane.b32.xlu1 %v3783_v19, %s3275_s17 }
 0x5a6   :  { %2354 = vrot.lane.b32.xlu0 %v3776_v15, %s3276_s18  ;;  %2058 = vrot.lane.b32.xlu1 %v3792_v20, %s3275_s17 }
 0x5aa   :  { %2358 = vrot.lane.b32.xlu0 %v3785_v24, %s3276_s18  ;;  %2344 = vrot.lane.b32.xlu1 %v3770_v7, %s3276_s18 }
 0x5ae   :  { %2507 = vrot.lane.b32.xlu0 %v3794_v26, %s3277_s19  ;;  %2348 = vrot.lane.b32.xlu1 %v3774_v13, %s3276_s18 }
 0x5b2   :  { %2511 = vrot.lane.b32.xlu0 %v3800_v27, %s3277_s19  ;;  %2352 = vrot.lane.b32.xlu1 %v3783_v19, %s3276_s18 }
 0x5b6   :  { %2515 = vrot.lane.b32.xlu0 %v3776_v15, %s3277_s19  ;;  %2356 = vrot.lane.b32.xlu1 %v3792_v20, %s3276_s18 }
 0x5ba   :  { %2519 = vrot.lane.b32.xlu0 %v3785_v24, %s3277_s19  ;;  %2505 = vrot.lane.b32.xlu1 %v3770_v7, %s3277_s19 }
 0x5be   :  { %2668 = vrot.lane.b32.xlu0 %v3794_v26, %s3278_s20  ;;  %2509 = vrot.lane.b32.xlu1 %v3774_v13, %s3277_s19 }
 0x5c2   :  { %2672 = vrot.lane.b32.xlu0 %v3800_v27, %s3278_s20  ;;  %2513 = vrot.lane.b32.xlu1 %v3783_v19, %s3277_s19 }
 0x5c6   :  { %2676 = vrot.lane.b32.xlu0 %v3776_v15, %s3278_s20  ;;  %2517 = vrot.lane.b32.xlu1 %v3792_v20, %s3277_s19 }
 0x5ca   :  { %2680 = vrot.lane.b32.xlu0 %v3785_v24, %s3278_s20  ;;  %2666 = vrot.lane.b32.xlu1 %v3770_v7, %s3278_s20 }
 0x5ce   :  { %2829 = vrot.lane.b32.xlu0 %v3794_v26, %s3279_s21  ;;  %2670 = vrot.lane.b32.xlu1 %v3774_v13, %s3278_s20 }
 0x5d2   :  { %2833 = vrot.lane.b32.xlu0 %v3800_v27, %s3279_s21  ;;  %2674 = vrot.lane.b32.xlu1 %v3783_v19, %s3278_s20 }
 0x5d4   :  { %v1563_v21 = vpop.permute.xlu1 %1562 }
 0x5d6   :  { %2837 = vrot.lane.b32.xlu0 %v3776_v15, %s3279_s21  ;;  %2678 = vrot.lane.b32.xlu1 %v3792_v20, %s3278_s20 }
 0x5d8   :  { %v1567_v28 = vpop.permute.xlu1 %1566  ;;  %v1573_v29 = vpop.permute.xlu0 %1572 }
 0x5d9   :  { %v1582_v55 = vsel %vm124_vm1, %v1563_v21, %v1567_v28 }
 0x5da   :  { %2841 = vrot.lane.b32.xlu0 %v3785_v24, %s3279_s21  ;;  %2827 = vrot.lane.b32.xlu1 %v3770_v7, %s3279_s21  ;;  %v1609_v9 = vmul.f32 %v1595_v54, %v1582_v55 }
 0x5dc   :  { %v1571_v30 = vpop.permute.xlu1 %1570  ;;  %v1577_v31 = vpop.permute.xlu0 %1576 }
 0x5dd   :  { %v1579_v35 = vsel %vm124_vm1, %v1573_v29, %v1577_v31  ;;  %v1580_v60 = vsel %vm124_vm1, %v1567_v28, %v1571_v30 }
 0x5de   :  { %2831 = vrot.lane.b32.xlu1 %v3774_v13, %s3279_s21  ;;  %v1615_v39 = vmul.f32 %v1603_v34, %v1579_v35  ;;  %v1610_v12 = vmul.f32 %v1599_v56, %v1580_v60  ;;  %v1620_v60 = vld [vmem:[%s4273_s8] sm:$0xf] }
 0x5e0   :  { %v1575_v36 = vpop.permute.xlu1 %1574  ;;  %v1727_v37 = vpop.permute.xlu0 %1726 }
 0x5e1   :  { %v1578_v38 = vsel %vm124_vm1, %v1571_v30, %v1575_v36  ;;  %v1584_v61 = vsel %vm124_vm1, %v1575_v36, %v1563_v21  ;;  %v3074_v36 = vld [vmem:[%s4268_s1 + $0x2] ss:$8 sm:$0xf] }
 0x5e2   :  { %v1611_v40 = vmul.f32 %v1603_v34, %v1578_v38  ;;  %2835 = vrot.lane.b32.xlu1 %v3783_v19, %s3279_s21  ;;  %v1608_v14 = vmul.f32 %v1591_v58, %v1584_v61 }
 0x5e4   :  { %v1619_v41 = vpack.c.bf16 %v1615_v39, %v1611_v40  ;;  %v1725_v42 = vpop.permute.xlu1 %1724  ;;  %v1731_v43 = vpop.permute.xlu0 %1730 }
 0x5e5   :  { %v1745_v16 = vsel %vm271_vm4, %v1727_v37, %v1731_v43 }
 0x5e6   :  { %3066 = vmatprep.subr.msk.bf16.mxu1 %vm1625_vm11, %v1619_v41  ;;  %2839 = vrot.lane.b32.xlu1 %v3792_v20, %s3279_s21  ;;  %v1775_v41 = vmul.f32 %v1757_v63, %v1745_v16  ;;  %v1926_v16 = vrot.slane %v3074_v36, %v3474_v4 }
 0x5e8   :  { %v1729_v45 = vpop.permute.xlu1 %1728  ;;  %v1735_v46 = vpop.permute.xlu0 %1734 }
 0x5e9   :  { %v1744_v5 = vsel %vm271_vm4, %v1725_v42, %v1729_v45  ;;  %v1743_v22 = vsel %vm271_vm4, %v1731_v43, %v1735_v46 }
 0x5ea   :  { %1559 = vperm.xlu1 %3261, %v1556_v44   ;;  %v1771_v18 = vmul.f32 %v1757_v63, %v1744_v5 }
 0x5ec   :  { %v1733_v51 = vpop.permute.xlu1 %1732  ;;  %v1739_v47 = vpop.permute.xlu0 %1738 }
 0x5ed   :  { %v1742_v52 = vsel %vm271_vm4, %v1729_v45, %v1733_v51  ;;  %v1741_v25 = vsel %vm271_vm4, %v1735_v46, %v1739_v47  ;;  %v1747_v23 = vsel %vm271_vm4, %v1739_v47, %v1727_v37  ;;  %v1776_v37 = vmul.f32 %v1761_v0, %v1743_v22 }
 0x5ee   :  { %v1772_v30 = vmul.f32 %v1761_v0, %v1742_v52  ;;  %v1777_v43 = vmul.f32 %v1765_v50, %v1741_v25 }
 0x5f0   :  { %v1737_v48 = vpop.permute.xlu1 %1736  ;;  %v3928_v53 = vpop.permute.xlu0 %1887  ;;  %v1780_v47 = vpack.c.bf16 %v1776_v37, %v1772_v30 }
 0x5f1   :  { %v1746_v10 = vsel %vm271_vm4, %v1737_v48, %v1725_v42  ;;  %v1740_v17 = vsel %vm271_vm4, %v1733_v51, %v1737_v48  ;;  %v1774_v42 = vmul.f32 %v1753_v6, %v1747_v23  ;;  %v1918_v48 = vrot.slane %v3074_v36, %v3463_v59 }
 0x5f2   :  { %v1773_v35 = vmul.f32 %v1765_v50, %v1740_v17  ;;  %v1794_v50 = vsel %vm1625_vm11, %v1780_v47, 0 }
 0x5f4   :  { %v3944_v1 = vpop.permute.xlu0 %1891  ;;  %v1565_v2 = vpop.permute.xlu1 %1564  ;;  %v1781_v55 = vpack.c.bf16 %v1777_v43, %v1773_v35 }
 0x5f5   :  { %v1585_v8 = vsel %vm124_vm1, %v1577_v31, %v1565_v2  ;;  %v1770_v31 = vmul.f32 %v1753_v6, %v1746_v10  ;;  %v1922_v10 = vrot.slane %v3074_v36, %v3472_v3 }
 0x5f6   :  { %v1612_v11 = vmul.f32 %v1591_v58, %v1585_v8 }
 0x5f7   :  { %v1778_v49 = vpack.c.bf16 %v1774_v42, %v1770_v31 }
 0x5f8   :  { %v1896_v21 = vpop.permute.xlu0 %1895  ;;  %v1569_v28 = vpop.permute.xlu1 %1568  ;;  %v1616_v38 = vpack.c.bf16 %v1612_v11, %v1608_v14  ;;  %v1914_v14 = vrot.slane %v3074_v36, %v3467_v62 }
 0x5f9   :  { %v1581_v33 = vsel %vm124_vm1, %v1569_v28, %v1573_v29  ;;  %v1583_v34 = vsel %vm124_vm1, %v1565_v2, %v1569_v28  ;;  %v1779_v29 = vpack.c.bf16 %v1775_v41, %v1771_v18  ;;  %v1788_v6 = vsel %vm1625_vm11, %v1778_v49, 0 }
 0x5fa   :  { %v1613_v39 = vmul.f32 %v1595_v54, %v1583_v34  ;;  %v1614_v40 = vmul.f32 %v1599_v56, %v1581_v33  ;;  %v1627_v58 = vsel %vm1625_vm11, %v1616_v38, 0  ;;  %v1906_v56 = vsel %vm418_vm5, %v3928_v53, %v3944_v1 }
 0x5fb   :  { %v1936_v2 = vmul.f32 %v1918_v48, %v1906_v56 }
 0x5fc   :  { %v1617_v44 = vpack.c.bf16 %v1613_v39, %v1609_v9  ;;  %v1618_v45 = vpack.c.bf16 %v1614_v40, %v1610_v12  ;;  %v1900_v46 = vpop.permute.xlu0 %1899  ;;  %v1886_v51 = vpop.permute.xlu1 %1885  ;;  %v1904_v12 = vsel %vm418_vm5, %v3944_v1, %v1896_v21 }
 0x5fd   :  { %v1902_v17 = vsel %vm418_vm5, %v1896_v21, %v1900_v46  ;;  %v1908_v18 = vsel %vm418_vm5, %v1900_v46, %v3928_v53  ;;  %v1937_v28 = vmul.f32 %v1922_v10, %v1904_v12  ;;  %v3080_v21 = vld [vmem:[%s4268_s1 + $0x3] ss:$8 sm:$0xf]  ;;  %v3069_v53 = vld [vmem:[%s4273_s8 + $0x4] sm:$0xf] }
 0x5fe   :  { %3064 = vmatprep.subr.msk.bf16.mxu0 %vm1625_vm11, %v1617_v44  ;;  %v1633_v54 = vsel %vm1625_vm11, %v1618_v45, 0  ;;  %v1935_v31 = vmul.f32 %v1914_v14, %v1908_v18  ;;  %v1938_v33 = vmul.f32 %v1926_v16, %v1902_v17  ;;  %v2079_v37 = vrot.slane %v3080_v21, %v3463_v59 }
 0x5ff   :  { %1639 = vmatpush1.bf16.msra.mxu0 %v1627_v58  ;;  %1680 = vmatpush1.bf16.msra.mxu1 %v1633_v54  ;;  %v2083_v49 = vrot.slane %v3080_v21, %v3472_v3 }
 0x600   :  { %v3984_v61 = vpop.permute.xlu0 %2048  ;;  %3070 = vmatprep.subr.msk.bf16.mxu0 %vm1625_vm11, %v1779_v29  ;;  %3072 = vmatprep.subr.msk.bf16.mxu1 %vm1625_vm11, %v1781_v55  ;;  %v1890_v63 = vpop.permute.xlu1 %1889  ;;  %v3086_v29 = vld [vmem:[%s4268_s1 + $0x4] ss:$8 sm:$0xf] }
 0x601   :  { %v1905_v0 = vsel %vm418_vm5, %v1886_v51, %v1890_v63  ;;  %v2216_v56 = vrot.slane %v3086_v29, %v3463_v59 }
 0x602   :  { %v1932_v5 = vmul.f32 %v1918_v48, %v1905_v0  ;;  %3065 = vmatmul.mubr.msk.bf16.vlgmr.msra.gmra.mrb[4].mxu0 %vm1621_vm12, %v1620_v60  ;;  %3067 = vmatmul.mubr.msk.bf16.vlgmr.msra.gmra.mrb[4].mxu1 %vm1621_vm12, %v1620_v60  ;;  %v2087_v0 = vrot.slane %v3080_v21, %v3474_v4 }
 0x603   :  { %1800 = vmatpush1.bf16.msra.mxu0 %v1788_v6  ;;  %1841 = vmatpush1.bf16.msra.mxu1 %v1794_v50  ;;  %v2234_v12 = vmul.f32 %v2216_v56, %v3800_v27  ;;  %v2220_v27 = vrot.slane %v3086_v29, %v3472_v3 }
 0x604   :  { %v1940_v8 = vpack.c.bf16 %v1936_v2, %v1932_v5  ;;  %v2053_v9 = vpop.permute.xlu0 %2052  ;;  %v1894_v52 = vpop.permute.xlu1 %1893  ;;  %1831 = vmatprep.mubr.bf16.mxu0 %v3271_v32  ;;  %1872 = vmatprep.mubr.bf16.mxu1 %v3271_v32 }
 0x605   :  { %v1903_v11 = vsel %vm418_vm5, %v1890_v63, %v1894_v52  ;;  %v2067_v43 = vsel %vm565_vm6, %v3984_v61, %v2053_v9  ;;  %v2075_v63 = vrot.slane %v3080_v21, %v3467_v62  ;;  %v2235_v21 = vmul.f32 %v2220_v27, %v3776_v15 }
 0x606   :  { %3076 = vmatprep.subr.msk.bf16.mxu0 %vm1625_vm11, %v1940_v8  ;;  %v1933_v22 = vmul.f32 %v1922_v10, %v1903_v11  ;;  %v2097_v47 = vmul.f32 %v2079_v37, %v2067_v43  ;;  %v2224_v8 = vrot.slane %v3086_v29, %v3474_v4  ;;  %v2231_v15 = vmul.f32 %v2220_v27, %v3783_v19  ;;  %v3081_v43 = vld [vmem:[%s4273_s8 + $0xc] sm:$0xf] }
 0x608   :  { %v2057_v25 = vpop.permute.xlu0 %2056  ;;  %v1898_v23 = vpop.permute.xlu1 %1897  ;;  %v1941_v36 = vpack.c.bf16 %v1937_v28, %v1933_v22 }
 0x609   :  { %v1901_v1 = vsel %vm418_vm5, %v1894_v52, %v1898_v23  ;;  %v1907_v30 = vsel %vm418_vm5, %v1898_v23, %v1886_v51  ;;  %v2065_v60 = vsel %vm565_vm6, %v2053_v9, %v2057_v25  ;;  %v3075_v9 = vld [vmem:[%s4273_s8 + $0x8] sm:$0xf] }
 0x60a   :  { %v1931_v34 = vmul.f32 %v1914_v14, %v1907_v30  ;;  %v1934_v35 = vmul.f32 %v1926_v16, %v1901_v1  ;;  %v1955_v44 = vsel %vm1625_vm11, %v1941_v36, 0  ;;  %v2098_v52 = vmul.f32 %v2083_v49, %v2065_v60 }
 0x60b   :  { %v2236_v14 = vmul.f32 %v2224_v8, %v3785_v24  ;;  %v2212_v24 = vrot.slane %v3086_v29, %v3467_v62 }
 0x60c   :  { %v1939_v38 = vpack.c.bf16 %v1935_v31, %v1931_v34  ;;  %v1942_v39 = vpack.c.bf16 %v1938_v33, %v1934_v35  ;;  %v2061_v40 = vpop.permute.xlu0 %2060  ;;  %v2047_v41 = vpop.permute.xlu1 %2046  ;;  %v2230_v33 = vmul.f32 %v2216_v56, %v3774_v13  ;;  %v2232_v34 = vmul.f32 %v2224_v8, %v3792_v20  ;;  %v3092_v20 = vld [vmem:[%s4268_s1 + $0x5] ss:$8 sm:$0xf] }
 0x60d   :  { %v2063_v5 = vsel %vm565_vm6, %v2057_v25, %v2061_v40  ;;  %v2069_v6 = vsel %vm565_vm6, %v2061_v40, %v3984_v61  ;;  %v2233_v35 = vmul.f32 %v2212_v24, %v3794_v26  ;;  %v2229_v40 = vmul.f32 %v2212_v24, %v3770_v7 }
 0x60e   :  { %3071 = vmatmul.mubr.msk.bf16.vlgmr.msra.gmra.mrb[4].mxu0 %vm1621_vm12, %v3069_v53  ;;  %3073 = vmatmul.mubr.msk.bf16.vlgmr.msra.gmra.mrb[4].mxu1 %vm1621_vm12, %v3069_v53  ;;  %v1949_v42 = vsel %vm1625_vm11, %v1939_v38, 0  ;;  %v2096_v16 = vmul.f32 %v2075_v63, %v2069_v6  ;;  %v2099_v17 = vmul.f32 %v2087_v0, %v2063_v5  ;;  %v2238_v38 = vpack.c.bf16 %v2234_v12, %v2230_v33 }
 0x60f   :  { %3078 = vmatprep.subr.msk.bf16.mxu1 %vm1625_vm11, %v1942_v39  ;;  %1961 = vmatpush1.bf16.msra.mxu0 %v1949_v42  ;;  %v2240_v39 = vpack.c.bf16 %v2236_v14, %v2232_v34  ;;  %v2237_v26 = vpack.c.bf16 %v2233_v35, %v2229_v40  ;;  %v2239_v42 = vpack.c.bf16 %v2235_v21, %v2231_v15 }
 0x610   :  { %2002 = vmatpush1.bf16.msra.mxu1 %v1955_v44  ;;  %v4029_v45 = vpop.permute.xlu0 %2346  ;;  %v2051_v46 = vpop.permute.xlu1 %2050  ;;  %1992 = vmatprep.mubr.bf16.mxu0 %v3271_v32  ;;  %v2373_v56 = vrot.slane %v3092_v20, %v3467_v62  ;;  %v2381_v60 = vrot.slane %v3092_v20, %v3472_v3 }
 0x611   :  { %v2066_v51 = vsel %vm565_vm6, %v2047_v41, %v2051_v46  ;;  %2033 = vmatprep.mubr.bf16.mxu1 %v3271_v32 }
 0x612   :  { %v2093_v48 = vmul.f32 %v2079_v37, %v2066_v51  ;;  %v2377_v37 = vrot.slane %v3092_v20, %v3463_v59  ;;  %v2247_v51 = vsel %vm1625_vm11, %v2237_v26, 0 }
 0x614   :  { %v2101_v55 = vpack.c.bf16 %v2097_v47, %v2093_v48  ;;  %v4039_v58 = vpop.permute.xlu0 %2350  ;;  %v2055_v54 = vpop.permute.xlu1 %2054  ;;  %v2385_v47 = vrot.slane %v3092_v20, %v3474_v4 }
 0x615   :  { %v2064_v2 = vsel %vm565_vm6, %v2051_v46, %v2055_v54  ;;  %v2365_v5 = vsel %vm846_vm7, %v4029_v45, %v4039_v58 }
 0x616   :  { %v2094_v50 = vmul.f32 %v2083_v49, %v2064_v2  ;;  %3082 = vmatprep.subr.msk.bf16.mxu0 %vm1625_vm11, %v2101_v55  ;;  %v2253_v49 = vsel %vm1625_vm11, %v2239_v42, 0  ;;  %v2394_v14 = vmul.f32 %v2373_v56, %v2365_v5 }
 0x618   :  { %v4058_v10 = vpop.permute.xlu0 %2354  ;;  %v2059_v11 = vpop.permute.xlu1 %2058  ;;  %v2102_v22 = vpack.c.bf16 %v2098_v52, %v2094_v50 }
 0x619   :  { %v2062_v61 = vsel %vm565_vm6, %v2055_v54, %v2059_v11  ;;  %v2068_v18 = vsel %vm565_vm6, %v2059_v11, %v2047_v41  ;;  %v2363_v7 = vsel %vm846_vm7, %v4039_v58, %v4058_v10 }
 0x61a   :  { %v2092_v25 = vmul.f32 %v2075_v63, %v2068_v18  ;;  %v2095_v23 = vmul.f32 %v2087_v0, %v2062_v61  ;;  %3077 = vmatmul.mubr.msk.bf16.vlgmr.msra.gmra.mrb[4].mxu0 %vm1621_vm12, %v3075_v9  ;;  %3079 = vmatmul.mubr.msk.bf16.vlgmr.msra.gmra.mrb[4].mxu1 %vm1621_vm12, %v3075_v9  ;;  %v2116_v53 = vsel %vm1625_vm11, %v2102_v22, 0  ;;  %v2395_v29 = vmul.f32 %v2377_v37, %v2363_v7 }
 0x61b   :  { %2153 = vmatprep.mubr.bf16.mxu0 %v3271_v32  ;;  %2194 = vmatprep.mubr.bf16.mxu1 %v3271_v32 }
 0x61c   :  { %v2100_v28 = vpack.c.bf16 %v2096_v16, %v2092_v25  ;;  %v2103_v1 = vpack.c.bf16 %v2099_v17, %v2095_v23  ;;  %v2359_v30 = vpop.permute.xlu0 %2358  ;;  %v2345_v31 = vpop.permute.xlu1 %2344  ;;  %v3098_v23 = vld [vmem:[%s4268_s1 + $0x6] ss:$8 sm:$0xf] }
 0x61d   :  { %v2367_v55 = vsel %vm846_vm7, %v2359_v30, %v4029_v45  ;;  %v2361_v6 = vsel %vm846_vm7, %v4058_v10, %v2359_v30  ;;  %v3087_v10 = vld [vmem:[%s4273_s8 + $0x10] sm:$0xf]  ;;  %v2538_v24 = vrot.slane %v3098_v23, %v3463_v59  ;;  %v2542_v21 = vrot.slane %v3098_v23, %v3472_v3 }
 0x61e   :  { %3084 = vmatprep.subr.msk.bf16.mxu1 %vm1625_vm11, %v2103_v1  ;;  %v2110_v36 = vsel %vm1625_vm11, %v2100_v28, 0  ;;  %v2397_v9 = vmul.f32 %v2385_v47, %v2367_v55  ;;  %v2396_v16 = vmul.f32 %v2381_v60, %v2361_v6 }
 0x61f   :  { %2122 = vmatpush1.bf16.msra.mxu0 %v2110_v36  ;;  %2163 = vmatpush1.bf16.msra.mxu1 %v2116_v53  ;;  %v2546_v36 = vrot.slane %v3098_v23, %v3474_v4 }
 0x620   :  { %v4080_v41 = vpop.permute.xlu0 %2507  ;;  %3088 = vmatprep.subr.msk.bf16.mxu0 %vm1625_vm11, %v2238_v38  ;;  %3090 = vmatprep.subr.msk.bf16.mxu1 %vm1625_vm11, %v2240_v39  ;;  %v2349_v13 = vpop.permute.xlu1 %2348 }
 0x621   :  { %v2364_v54 = vsel %vm846_vm7, %v2345_v31, %v2349_v13 }
 0x622   :  { %v2390_v52 = vmul.f32 %v2373_v56, %v2364_v54  ;;  %v3104_v54 = vld [vmem:[%s4268_s1 + $0x7] ss:$8 sm:$0xf] }
 0x624   :  { %v2512_v44 = vpop.permute.xlu0 %2511  ;;  %v2353_v46 = vpop.permute.xlu1 %2352  ;;  %v2398_v61 = vpack.c.bf16 %v2394_v14, %v2390_v52 }
 0x625   :  { %v2362_v19 = vsel %vm846_vm7, %v2349_v13, %v2353_v46  ;;  %v2526_v35 = vsel %vm993_vm8, %v4080_v41, %v2512_v44 }
 0x626   :  { %v2391_v48 = vmul.f32 %v2377_v37, %v2362_v19  ;;  %3083 = vmatmul.mubr.msk.bf16.vlgmr.msra.gmra.mrb[4].mxu0 %vm1621_vm12, %v3081_v43  ;;  %3085 = vmatmul.mubr.msk.bf16.vlgmr.msra.gmra.mrb[4].mxu1 %vm1621_vm12, %v3081_v43  ;;  %v2408_v27 = vsel %vm1625_vm11, %v2398_v61, 0 }
 0x627   :  { %2259 = vmatpush1.bf16.msra.mxu0 %v2247_v51  ;;  %2300 = vmatpush1.bf16.msra.mxu1 %v2253_v49 }
 0x628   :  { %v2399_v63 = vpack.c.bf16 %v2395_v29, %v2391_v48  ;;  %v2516_v0 = vpop.permute.xlu0 %2515  ;;  %v2357_v2 = vpop.permute.xlu1 %2356  ;;  %2290 = vmatprep.mubr.bf16.mxu0 %v3271_v32  ;;  %2331 = vmatprep.mubr.bf16.mxu1 %v3271_v32 }
 0x629   :  { %v2360_v50 = vsel %vm846_vm7, %v2353_v46, %v2357_v2  ;;  %v2366_v8 = vsel %vm846_vm7, %v2357_v2, %v2345_v31  ;;  %v2524_v1 = vsel %vm993_vm8, %v2512_v44, %v2516_v0  ;;  %v2534_v31 = vrot.slane %v3098_v23, %v3467_v62 }
 0x62a   :  { %v2392_v11 = vmul.f32 %v2381_v60, %v2360_v50  ;;  %v2393_v12 = vmul.f32 %v2385_v47, %v2366_v8  ;;  %3094 = vmatprep.subr.msk.bf16.mxu0 %vm1625_vm11, %v2399_v63  ;;  %v2556_v38 = vmul.f32 %v2538_v24, %v2524_v1  ;;  %v2699_v50 = vrot.slane %v3104_v54, %v3463_v59 }
 0x62b   :  { %v2555_v20 = vmul.f32 %v2534_v31, %v2526_v35 }
 0x62c   :  { %v2401_v17 = vpack.c.bf16 %v2397_v9, %v2393_v12  ;;  %v2520_v45 = vpop.permute.xlu0 %2519  ;;  %v2506_v58 = vpop.permute.xlu1 %2505  ;;  %v2400_v18 = vpack.c.bf16 %v2396_v16, %v2392_v11  ;;  %v2703_v12 = vrot.slane %v3104_v54, %v3472_v3 }
 0x62d   :  { %v2522_v39 = vsel %vm993_vm8, %v2516_v0, %v2520_v45  ;;  %v2528_v15 = vsel %vm993_vm8, %v2520_v45, %v4080_v41  ;;  %v3093_v41 = vld [vmem:[%s4273_s8 + $0x14] sm:$0xf]  ;;  %v2695_v0 = vrot.slane %v3104_v54, %v3467_v62 }
 0x62e   :  { %3096 = vmatprep.subr.msk.bf16.mxu1 %vm1625_vm11, %v2401_v17  ;;  %v2414_v28 = vsel %vm1625_vm11, %v2400_v18, 0  ;;  %v2557_v7 = vmul.f32 %v2542_v21, %v2522_v39  ;;  %v2558_v46 = vmul.f32 %v2546_v36, %v2528_v15  ;;  %v2707_v17 = vrot.slane %v3104_v54, %v3474_v4 }
 0x630   :  { %v4128_v22 = vpop.permute.xlu0 %2668  ;;  %v2510_v25 = vpop.permute.xlu1 %2509 }
 0x631   :  { %v2525_v30 = vsel %vm993_vm8, %v2506_v58, %v2510_v25 }
 0x632   :  { %3089 = vmatmul.mubr.msk.bf16.vlgmr.msra.gmra.mrb[4].mxu0 %vm1621_vm12, %v3087_v10  ;;  %3091 = vmatmul.mubr.msk.bf16.vlgmr.msra.gmra.mrb[4].mxu1 %vm1621_vm12, %v3087_v10  ;;  %v2551_v40 = vmul.f32 %v2534_v31, %v2525_v30 }
 0x633   :  { %2420 = vmatpush1.bf16.msra.mxu0 %v2408_v27  ;;  %2461 = vmatpush1.bf16.msra.mxu1 %v2414_v28 }
 0x634   :  { %v2673_v33 = vpop.permute.xlu0 %2672  ;;  %v2514_v34 = vpop.permute.xlu1 %2513  ;;  %2451 = vmatprep.mubr.bf16.mxu0 %v3271_v32  ;;  %2492 = vmatprep.mubr.bf16.mxu1 %v3271_v32  ;;  %v2559_v19 = vpack.c.bf16 %v2555_v20, %v2551_v40 }
 0x635   :  { %v2523_v53 = vsel %vm993_vm8, %v2510_v25, %v2514_v34  ;;  %v2687_v6 = vsel %vm1140_vm9, %v4128_v22, %v2673_v33  ;;  %v3099_v25 = vld [vmem:[%s4273_s8 + $0x18] sm:$0xf] }
 0x636   :  { %v2552_v13 = vmul.f32 %v2538_v24, %v2523_v53  ;;  %v2569_v56 = vsel %vm1625_vm11, %v2559_v19, 0  ;;  %v2716_v11 = vmul.f32 %v2695_v0, %v2687_v6 }
 0x638   :  { %v2560_v26 = vpack.c.bf16 %v2556_v38, %v2552_v13  ;;  %v2677_v37 = vpop.permute.xlu0 %2676  ;;  %v2518_v42 = vpop.permute.xlu1 %2517 }
 0x639   :  { %v2521_v43 = vsel %vm993_vm8, %v2514_v34, %v2518_v42  ;;  %v2527_v44 = vsel %vm993_vm8, %v2518_v42, %v2506_v58  ;;  %v2685_v8 = vsel %vm1140_vm9, %v2673_v33, %v2677_v37 }
 0x63a   :  { %v2553_v51 = vmul.f32 %v2542_v21, %v2521_v43  ;;  %v2554_v29 = vmul.f32 %v2546_v36, %v2527_v44  ;;  %3100 = vmatprep.subr.msk.bf16.mxu0 %vm1625_vm11, %v2560_v26  ;;  %v2717_v16 = vmul.f32 %v2699_v50, %v2685_v8  ;;  %v3110_v36 = vld [vmem:[%s4268_s1 + $0x20] ss:$8 sm:$0xf] }
 0x63b   :  { %v2856_v39 = vrot.slane %v3110_v36, %v3467_v62  ;;  %v2860_v15 = vrot.slane %v3110_v36, %v3463_v59  ;;  %v2868_v19 = vrot.slane %v3110_v36, %v3474_v4 }
 0x63c   :  { %v2561_v47 = vpack.c.bf16 %v2557_v7, %v2553_v51  ;;  %v2562_v48 = vpack.c.bf16 %v2558_v46, %v2554_v29  ;;  %v2681_v49 = vpop.permute.xlu0 %2680  ;;  %v2667_v55 = vpop.permute.xlu1 %2666  ;;  %v3105_v7 = vld [vmem:[%s4273_s8 + $0x1c] sm:$0xf]  ;;  %v2864_v46 = vrot.slane %v3110_v36, %v3472_v3 }
 0x63d   :  { %v2683_v45 = vsel %vm1140_vm9, %v2677_v37, %v2681_v49  ;;  %v2689_v61 = vsel %vm1140_vm9, %v2681_v49, %v4128_v22 }
 0x63e   :  { %3095 = vmatmul.mubr.msk.bf16.vlgmr.msra.gmra.mrb[4].mxu0 %vm1621_vm12, %v3093_v41  ;;  %3097 = vmatmul.mubr.msk.bf16.vlgmr.msra.gmra.mrb[4].mxu1 %vm1621_vm12, %v3093_v41  ;;  %v2575_v60 = vsel %vm1625_vm11, %v2561_v47, 0  ;;  %v2718_v27 = vmul.f32 %v2703_v12, %v2683_v45  ;;  %v2719_v30 = vmul.f32 %v2707_v17, %v2689_v61 }
 0x63f   :  { %2581 = vmatpush1.bf16.msra.mxu0 %v2569_v56  ;;  %3102 = vmatprep.subr.msk.bf16.mxu1 %vm1625_vm11, %v2562_v48 }
 0x640   :  { %2622 = vmatpush1.bf16.msra.mxu1 %v2575_v60  ;;  %v2671_v63 = vpop.permute.xlu1 %2670  ;;  %2612 = vmatprep.mubr.bf16.mxu0 %v3271_v32  ;;  %v4175_v2 = vpop.permute.xlu0 %2829 }
 0x641   :  { %v2686_v5 = vsel %vm1140_vm9, %v2667_v55, %v2671_v63  ;;  %2653 = vmatprep.mubr.bf16.mxu1 %v3271_v32 }
 0x642   :  { %v2712_v9 = vmul.f32 %v2695_v0, %v2686_v5 }
 0x644   :  { %v2675_v52 = vpop.permute.xlu1 %2674  ;;  %v2720_v18 = vpack.c.bf16 %v2716_v11, %v2712_v9  ;;  %v2834_v10 = vpop.permute.xlu0 %2833 }
 0x645   :  { %v2684_v14 = vsel %vm1140_vm9, %v2671_v63, %v2675_v52  ;;  %v2848_v13 = vsel %vm1287_vm10, %v4175_v2, %v2834_v10 }
 0x646   :  { %v2713_v58 = vmul.f32 %v2699_v50, %v2684_v14  ;;  %v2730_v22 = vsel %vm1625_vm11, %v2720_v18, 0  ;;  %v2877_v62 = vmul.f32 %v2856_v39, %v2848_v13 }
 0x648   :  { %v2721_v23 = vpack.c.bf16 %v2717_v16, %v2713_v58  ;;  %v2679_v24 = vpop.permute.xlu1 %2678  ;;  %v2838_v53 = vpop.permute.xlu0 %2837 }
 0x649   :  { %v2682_v28 = vsel %vm1140_vm9, %v2675_v52, %v2679_v24  ;;  %v2688_v1 = vsel %vm1140_vm9, %v2679_v24, %v2667_v55  ;;  %v2846_v26 = vsel %vm1287_vm10, %v2834_v10, %v2838_v53 }
 0x64a   :  { %v2714_v31 = vmul.f32 %v2703_v12, %v2682_v28  ;;  %v2715_v33 = vmul.f32 %v2707_v17, %v2688_v1  ;;  %3101 = vmatmul.mubr.msk.bf16.vlgmr.msra.gmra.mrb[4].mxu0 %vm1621_vm12, %v3099_v25  ;;  %3103 = vmatmul.mubr.msk.bf16.vlgmr.msra.gmra.mrb[4].mxu1 %vm1621_vm12, %v3099_v25  ;;  %v2878_v44 = vmul.f32 %v2860_v15, %v2846_v26 }
 0x64b   :  { %3106 = vmatprep.subr.msk.bf16.mxu0 %vm1625_vm11, %v2721_v23  ;;  %2773 = vmatprep.mubr.bf16.mxu0 %v3271_v32 }
 0x64c   :  { %v2722_v34 = vpack.c.bf16 %v2718_v27, %v2714_v31  ;;  %v2723_v35 = vpack.c.bf16 %v2719_v30, %v2715_v33  ;;  %2742 = vmatpush1.bf16.msra.mxu0 %v2730_v22  ;;  %v2828_v21 = vpop.permute.xlu1 %2827  ;;  %2814 = vmatprep.mubr.bf16.mxu1 %v3271_v32  ;;  %v2842_v42 = vpop.permute.xlu0 %2841 }
 0x64d   :  { %v2844_v51 = vsel %vm1287_vm10, %v2838_v53, %v2842_v42  ;;  %v2850_v47 = vsel %vm1287_vm10, %v2842_v42, %v4175_v2 }
 0x64e   :  { %3108 = vmatprep.subr.msk.bf16.mxu1 %vm1625_vm11, %v2723_v35  ;;  %v2736_v38 = vsel %vm1625_vm11, %v2722_v34, 0  ;;  %v2879_v48 = vmul.f32 %v2864_v46, %v2844_v51  ;;  %v2880_v54 = vmul.f32 %v2868_v19, %v2850_v47 }
 0x64f   :  { %2783 = vmatpush1.bf16.msra.mxu1 %v2736_v38 }
 0x650   :  { %v2832_v40 = vpop.permute.xlu1 %2831 }
 0x651   :  { %v2847_v20 = vsel %vm1287_vm10, %v2828_v21, %v2832_v40 }
 0x652   :  { %v2873_v37 = vmul.f32 %v2856_v39, %v2847_v20 }
 0x654   :  { %v2836_v43 = vpop.permute.xlu1 %2835  ;;  %v2881_v29 = vpack.c.bf16 %v2877_v62, %v2873_v37 }
 0x655   :  { %v2845_v59 = vsel %vm1287_vm10, %v2832_v40, %v2836_v43 }
 0x656   :  { %v2874_v41 = vmul.f32 %v2860_v15, %v2845_v59  ;;  %3107 = vmatmul.mubr.msk.bf16.vlgmr.msra.gmra.mrb[4].mxu0 %vm1621_vm12, %v3105_v7  ;;  %3109 = vmatmul.mubr.msk.bf16.vlgmr.msra.gmra.mrb[4].mxu1 %vm1621_vm12, %v3105_v7  ;;  %v2891_v63 = vsel %vm1625_vm11, %v2881_v29, 0 }
 0x657   :  { %2934 = vmatprep.mubr.bf16.mxu0 %v3271_v32  ;;  %2975 = vmatprep.mubr.bf16.mxu1 %v3271_v32 }
 0x658   :  { %v2882_v3 = vpack.c.bf16 %v2878_v44, %v2874_v41  ;;  %v2840_v4 = vpop.permute.xlu1 %2839 }
 0x659   :  { %v2843_v49 = vsel %vm1287_vm10, %v2836_v43, %v2840_v4  ;;  %v2849_v55 = vsel %vm1287_vm10, %v2840_v4, %v2828_v21 }
 0x65a   :  { %v2875_v56 = vmul.f32 %v2864_v46, %v2843_v49  ;;  %v2876_v60 = vmul.f32 %v2868_v19, %v2849_v55  ;;  %3112 = vmatprep.subr.msk.bf16.mxu0 %vm1625_vm11, %v2882_v3 }
 0x65b   :  { %2903 = vmatpush1.bf16.msra.mxu0 %v2891_v63 }
 0x65c   :  { %v2883_v0 = vpack.c.bf16 %v2879_v48, %v2875_v56  ;;  %v2884_v2 = vpack.c.bf16 %v2880_v54, %v2876_v60 }
 0x65e   :  { %3114 = vmatprep.subr.msk.bf16.mxu1 %vm1625_vm11, %v2884_v2  ;;  %v2897_v32 = vsel %vm1625_vm11, %v2883_v0, 0 }
 0x65f   :  { %2944 = vmatpush1.bf16.msra.mxu1 %v2897_v32 }
 0x662   :  { %3113 = vmatmul.mubr.msk.bf16.vlgmr.msra.gmra.mrb[4].mxu0 %vm1621_vm12, %v3111_v57  ;;  %3115 = vmatmul.mubr.msk.bf16.vlgmr.msra.gmra.mrb[4].mxu1 %vm1621_vm12, %v3111_v57 }
 0x669   :  { %v1560_v5 = vpop.permute.xlu1 %1559 }
 0x735   :  { %v2936_v6 = vpop.f32.mrb[4].mxu0  ;;  %v2977_v50 = vpop.f32.mrb[4].mxu1 }
 0x736   :  { %v3120_v8 = vadd.f32 %v2936_v6, %v1560_v5  ;;  %v3122_v9 = vadd.f32 %v2977_v50, %v1560_v5  ;;  %v2938_v52 = vpop.f32.mrb[5].mxu0  ;;  %v2979_v11 = vpop.f32.mrb[5].mxu1 }
 0x737   :  { %v3121_v12 = vadd.f32 %v2938_v52, %v1560_v5  ;;  %v3123_v14 = vadd.f32 %v2979_v11, %v1560_v5  ;;  %v2940_v16 = vpop.f32.mrb[6].mxu0  ;;  %v2981_v17 = vpop.f32.mrb[6].mxu1 }
 0x738   :  { %v2992_v45 = vrot.slane %v3120_v8, 4  ;;  %v2994_v58 = vrot.slane %v3122_v9, 4  ;;  %v2941_v61 = vpop.f32.mrb[7].mxu0  ;;  %v2982_v18 = vpop.f32.mrb[7].mxu1 }
 0x739   :  { %v2993_v10 = vrot.slane %v3121_v12, 4  ;;  %v2995_v25 = vrot.slane %v3123_v14, 4 }
 0x73a   :  { %3000 = vst [vmem:[%s4264_s10 + $0x40] ss:$-28 sps:$4 sm:$0xff] %v2992_v45   ;;  %3002 = vst [vmem:[%s4264_s10 + $0x50] ss:$-28 sps:$4 sm:$0xff] %v2994_v58  }
 0x73b   :  { %3001 = vst [vmem:[%s4264_s10 + $0x48] ss:$-28 sps:$4 sm:$0xff] %v2993_v10   ;;  %3003 = vst [vmem:[%s4264_s10 + $0x58] ss:$-28 sps:$4 sm:$0xff] %v2995_v25  }

</bundles_post_ra>
